<compile_context>
chip_gen: v5e
topology: v5e:2x2
jax: 0.10.0
libtpu: 0.0.40
codegen_flags: <defaults>
</compile_context>

<pallas_src>
import jax
import jax.numpy as jnp
from jax.experimental import pallas as pl
from jax.experimental.pallas import tpu as pltpu


def ae_kernel(x_ref, w1_ref, b1_ref, w2_ref, b2_ref,
              w3_ref, b3_ref, w4_ref, b4_ref, o_ref):
    # Cast the streamed input tile to bf16 once, in VMEM (no wrapper HBM pass).
    x = x_ref[...].astype(jnp.bfloat16)

    # encode: Linear -> ReLU -> Linear -> ReLU (bf16 MXU inputs, f32 accumulate,
    # bias-add/ReLU kept in f32 — v5e has no bf16 VPU path).
    h1 = jnp.dot(x, w1_ref[...], preferred_element_type=jnp.float32)
    h1 = jnp.maximum(h1 + b1_ref[...], 0.0).astype(jnp.bfloat16)
    z = jnp.dot(h1, w2_ref[...], preferred_element_type=jnp.float32)
    z = jnp.maximum(z + b2_ref[...], 0.0).astype(jnp.bfloat16)

    # decode: Linear -> ReLU -> Linear -> Sigmoid
    h2 = jnp.dot(z, w3_ref[...], preferred_element_type=jnp.float32)
    h2 = jnp.maximum(h2 + b3_ref[...], 0.0).astype(jnp.bfloat16)
    logits = jnp.dot(h2, w4_ref[...], preferred_element_type=jnp.float32)
    logits = logits + b4_ref[...]

    # Exact, overflow-free sigmoid: 0.5 * (tanh(x/2) + 1).  tanh -> EUP.
    sig = 0.5 * (jnp.tanh(0.5 * logits) + 1.0)
    o_ref[...] = sig.astype(o_ref.dtype)


def _round_up(x, m):
    return (x + m - 1) // m * m


def _vmem_cap_bytes():
    """~75% of per-core VMEM (≈48 MiB on v7x, ≈96 MiB on v5e/v6e)."""
    cap = None
    try:
        info = pltpu.get_tpu_info()
        cap = getattr(info, "vmem_capacity_bytes", None)
    except Exception:
        cap = None
    if not cap:
        cap = 64 * 2**20  # conservative (v7x-sized) fallback
    return int(0.75 * cap)


def _vmem_budget_bytes(tb, d, f1, lat, out_bytes):
    bf16, f32 = 2, 4
    weights = (d * f1 + f1 * lat + lat * f1 + f1 * d) * bf16 \
        + (f1 + lat + f1 + d) * f32
    io = 2 * tb * d * f32 + 2 * tb * d * out_bytes   # double-buffered x / out tiles
    act = tb * (f1 + lat + f1 + d) * (f32 + bf16)    # intermediate activations
    return weights + io + act


def _batch_tile(B, block_b):
    """Batch tile: as big as reasonable (roofline/MXU friendly) but with >=2
    grid steps when possible so the 'parallel' axis shards across both v7x
    TensorCores."""
    if B <= 8:
        return B  # single (possibly partial) block; block dim == full array dim
    tb = min(block_b, _round_up(pl.cdiv(B, 2), 8))
    return max(tb, 8)


def _build_call(tb, D, B, shapes, out_dtype, vmem_limit, single_buffer_weights):
    if single_buffer_weights:
        def resident(shape):
            return pl.BlockSpec(shape, lambda i: (0, 0),
                                pipeline_mode=pl.Buffered(1))
    else:
        def resident(shape):
            return pl.BlockSpec(shape, lambda i: (0, 0))

    w1s, b1s, w2s, b2s, w3s, b3s, w4s, b4s = shapes
    return pl.pallas_call(
        ae_kernel,
        out_shape=jax.ShapeDtypeStruct((B, D), out_dtype),
        grid=(pl.cdiv(B, tb),),
        in_specs=[
            pl.BlockSpec((tb, D), lambda i: (i, 0)),   # x: streamed over batch
            resident(w1s), resident(b1s),
            resident(w2s), resident(b2s),
            resident(w3s), resident(b3s),
            resident(w4s), resident(b4s),
        ],
        out_specs=pl.BlockSpec((tb, D), lambda i: (i, 0)),
        compiler_params=pltpu.CompilerParams(
            dimension_semantics=("parallel",),
            vmem_limit_bytes=vmem_limit,
        ),
    )


def ae_forward(x, params, *, block_b=512, out_dtype=jnp.float32):
    """x: (B, C, H, W).  params: dict of weights/biases (float32)."""
    B, C, H, W = x.shape
    D = C * H * W
    F1 = params["w1"].shape[1]
    LAT = params["w2"].shape[1]

    tb = _batch_tile(B, block_b)

    # Keep x in its incoming dtype (no wrapper-side cast / pad HBM passes).
    x_flat = x.reshape(B, D)

    # bf16 MXU operands (tiny, cast once); biases stay f32 for the epilogue.
    w1 = params["w1"].astype(jnp.bfloat16)
    w2 = params["w2"].astype(jnp.bfloat16)
    w3 = params["w3"].astype(jnp.bfloat16)
    w4 = params["w4"].astype(jnp.bfloat16)
    b1 = params["b1"].astype(jnp.float32)
    b2 = params["b2"].astype(jnp.float32)
    b3 = params["b3"].astype(jnp.float32)
    b4 = params["b4"].astype(jnp.float32)

    out_bytes = jnp.finfo(out_dtype).bits // 8
    vmem_budget = _vmem_budget_bytes(tb, D, F1, LAT, out_bytes)
    vmem_limit = int(min(max(2 * vmem_budget, 32 * 2**20), _vmem_cap_bytes()))

    shapes = (w1.shape, b1.shape, w2.shape, b2.shape,
              w3.shape, b3.shape, w4.shape, b4.shape)
    args = (x_flat, w1, b1, w2, b2, w3, b3, w4, b4)

    try:
        out_flat = _build_call(tb, D, B, shapes, out_dtype, vmem_limit, True)(*args)
    except Exception:
        # Fallback if pl.Buffered(1) single-buffering is rejected by this
        # Pallas version: default double-buffered resident specs.
        out_flat = _build_call(tb, D, B, shapes, out_dtype, vmem_limit, False)(*args)

    return out_flat.reshape(B, C, H, W)


def init_params(key, img_channel, img_size, encode_f1_size, latent_size):
    """Deterministic init mimicking nn.Linear's U(-1/sqrt(fan_in), 1/sqrt(fan_in))."""
    D = img_channel * img_size ** 2
    dims = [
        ("w1", (D, encode_f1_size)), ("b1", (1, encode_f1_size)),
        ("w2", (encode_f1_size, latent_size)), ("b2", (1, latent_size)),
        ("w3", (latent_size, encode_f1_size)), ("b3", (1, encode_f1_size)),
        ("w4", (encode_f1_size, D)), ("b4", (1, D)),
    ]
    params = {}
    keys = jax.random.split(key, len(dims))
    for (name, shape), k in zip(dims, keys):
        fan_in = shape[0] if name.startswith("w") else shape[1]
        bound = 1.0 / jnp.sqrt(jnp.float32(fan_in))
        params[name] = jax.random.uniform(
            k, shape, dtype=jnp.float32, minval=-bound, maxval=bound)
    return params


def ae_reference(x, params):
    """Pure-JAX f32 reference for sanity checking."""
    B = x.shape[0]
    h = x.reshape(B, -1)
    h = jnp.maximum(h @ params["w1"] + params["b1"], 0.0)
    h = jnp.maximum(h @ params["w2"] + params["b2"], 0.0)
    h = jnp.maximum(h @ params["w3"] + params["b3"], 0.0)
    h = jax.nn.sigmoid(h @ params["w4"] + params["b4"])
    return h.reshape(x.shape)


if __name__ == "__main__":
    # Small shapes consistent with the module's forward:
    # batch=2, img_channel=4, img_size=16 -> flattened features = 1024.
    B, C, IMG = 2, 4, 16
    encode_f1_size, latent_size = 128, 32

    key = jax.random.PRNGKey(0)
    k_x, k_p = jax.random.split(key)
    x = jax.random.normal(k_x, (B, C, IMG, IMG), dtype=jnp.float32)
    params = init_params(k_p, C, IMG, encode_f1_size, latent_size)

    ref = ae_reference(x, params)

    # Default: f32 output (matches the PyTorch module's dtype).
    out = ae_forward(x, params)
    jax.block_until_ready(out)
    assert out.shape == x.shape and out.dtype == jnp.float32
    err = float(jnp.max(jnp.abs(out - ref)))
    assert err < 2e-2, f"f32-out max abs err {err}"

    # Traffic-lean variant: bf16 output (sigmoid output in [0, 1], quantization
    # error ~4e-3 — well inside tolerance).
    out_bf16 = ae_forward(x, params, out_dtype=jnp.bfloat16)
    jax.block_until_ready(out_bf16)
    err_bf16 = float(jnp.max(jnp.abs(out_bf16.astype(jnp.float32) - ref)))
    assert err_bf16 < 2.5e-2, f"bf16-out max abs err {err_bf16}"

    print("KERNEL_OK")
</pallas_src>

<mosaic_0001>
module attributes {stable_mosaic.version = 11 : i64} {
  func.func @ae_kernel(%arg0: i32, %arg1: memref<2x1024xf32, #tpu.memory_space<vmem>>, %arg2: memref<1024x128xbf16, #tpu.memory_space<vmem>>, %arg3: memref<1x128xf32, #tpu.memory_space<vmem>>, %arg4: memref<128x32xbf16, #tpu.memory_space<vmem>>, %arg5: memref<1x32xf32, #tpu.memory_space<vmem>>, %arg6: memref<32x128xbf16, #tpu.memory_space<vmem>>, %arg7: memref<1x128xf32, #tpu.memory_space<vmem>>, %arg8: memref<128x1024xbf16, #tpu.memory_space<vmem>>, %arg9: memref<1x1024xf32, #tpu.memory_space<vmem>>, %arg10: memref<2x1024xf32, #tpu.memory_space<vmem>>) attributes {dimension_semantics = [#tpu.dimension_semantics<parallel>], iteration_bounds = array<i64: 1>, scalar_prefetch = 0 : i64, scratch_operands = 0 : i64, tpu.core_type = #tpu.core_type<tc>, window_params = [{transform_indices = @transform_0, window_bounds = array<i64: 2, 1024>}, {pipeline_mode = #tpu.pipeline_mode<synchronous>, transform_indices = @transform_1, window_bounds = array<i64: 1024, 128>}, {pipeline_mode = #tpu.pipeline_mode<synchronous>, transform_indices = @transform_2, window_bounds = array<i64: 1, 128>}, {pipeline_mode = #tpu.pipeline_mode<synchronous>, transform_indices = @transform_3, window_bounds = array<i64: 128, 32>}, {pipeline_mode = #tpu.pipeline_mode<synchronous>, transform_indices = @transform_4, window_bounds = array<i64: 1, 32>}, {pipeline_mode = #tpu.pipeline_mode<synchronous>, transform_indices = @transform_5, window_bounds = array<i64: 32, 128>}, {pipeline_mode = #tpu.pipeline_mode<synchronous>, transform_indices = @transform_6, window_bounds = array<i64: 1, 128>}, {pipeline_mode = #tpu.pipeline_mode<synchronous>, transform_indices = @transform_7, window_bounds = array<i64: 128, 1024>}, {pipeline_mode = #tpu.pipeline_mode<synchronous>, transform_indices = @transform_8, window_bounds = array<i64: 1, 1024>}, {transform_indices = @transform_9, window_bounds = array<i64: 2, 1024>}]} {
    %c0 = arith.constant 0 : index
    %c0_0 = arith.constant 0 : index
    %0 = vector.load %arg1[%c0, %c0_0] : memref<2x1024xf32, #tpu.memory_space<vmem>>, vector<2x1024xf32>
    %1 = arith.truncf %0 : vector<2x1024xf32> to vector<2x1024xbf16>
    %c0_1 = arith.constant 0 : index
    %c0_2 = arith.constant 0 : index
    %2 = vector.load %arg2[%c0_1, %c0_2] : memref<1024x128xbf16, #tpu.memory_space<vmem>>, vector<1024x128xbf16>
    %cst = arith.constant dense<0.000000e+00> : vector<2x128xf32>
    %3 = tpu.matmul %1, %2, %cst {dimension_numbers = #tpu.dot_dimension_numbers<[1], [0], [0], [1], [0, 0, 1, 1], [], []>} : vector<2x1024xbf16>, vector<1024x128xbf16>, vector<2x128xf32> -> vector<2x128xf32>
    %c0_3 = arith.constant 0 : index
    %c0_4 = arith.constant 0 : index
    %4 = vector.load %arg3[%c0_3, %c0_4] : memref<1x128xf32, #tpu.memory_space<vmem>>, vector<1x128xf32>
    %5 = vector.broadcast %4 : vector<1x128xf32> to vector<2x128xf32>
    %6 = arith.addf %3, %5 : vector<2x128xf32>
    %cst_5 = arith.constant 0.000000e+00 : f32
    %7 = vector.broadcast %cst_5 : f32 to vector<2x128xf32>
    %8 = arith.maximumf %6, %7 : vector<2x128xf32>
    %9 = arith.truncf %8 : vector<2x128xf32> to vector<2x128xbf16>
    %c0_6 = arith.constant 0 : index
    %c0_7 = arith.constant 0 : index
    %10 = vector.load %arg4[%c0_6, %c0_7] : memref<128x32xbf16, #tpu.memory_space<vmem>>, vector<128x32xbf16>
    %cst_8 = arith.constant dense<0.000000e+00> : vector<2x32xf32>
    %11 = tpu.matmul %9, %10, %cst_8 {dimension_numbers = #tpu.dot_dimension_numbers<[1], [0], [0], [1], [0, 0, 1, 1], [], []>} : vector<2x128xbf16>, vector<128x32xbf16>, vector<2x32xf32> -> vector<2x32xf32>
    %c0_9 = arith.constant 0 : index
    %c0_10 = arith.constant 0 : index
    %12 = vector.load %arg5[%c0_9, %c0_10] : memref<1x32xf32, #tpu.memory_space<vmem>>, vector<1x32xf32>
    %13 = vector.broadcast %12 : vector<1x32xf32> to vector<2x32xf32>
    %14 = arith.addf %11, %13 : vector<2x32xf32>
    %cst_11 = arith.constant 0.000000e+00 : f32
    %15 = vector.broadcast %cst_11 : f32 to vector<2x32xf32>
    %16 = arith.maximumf %14, %15 : vector<2x32xf32>
    %17 = arith.truncf %16 : vector<2x32xf32> to vector<2x32xbf16>
    %c0_12 = arith.constant 0 : index
    %c0_13 = arith.constant 0 : index
    %18 = vector.load %arg6[%c0_12, %c0_13] : memref<32x128xbf16, #tpu.memory_space<vmem>>, vector<32x128xbf16>
    %cst_14 = arith.constant dense<0.000000e+00> : vector<2x128xf32>
    %19 = tpu.matmul %17, %18, %cst_14 {dimension_numbers = #tpu.dot_dimension_numbers<[1], [0], [0], [1], [0, 0, 1, 1], [], []>} : vector<2x32xbf16>, vector<32x128xbf16>, vector<2x128xf32> -> vector<2x128xf32>
    %c0_15 = arith.constant 0 : index
    %c0_16 = arith.constant 0 : index
    %20 = vector.load %arg7[%c0_15, %c0_16] : memref<1x128xf32, #tpu.memory_space<vmem>>, vector<1x128xf32>
    %21 = vector.broadcast %20 : vector<1x128xf32> to vector<2x128xf32>
    %22 = arith.addf %19, %21 : vector<2x128xf32>
    %cst_17 = arith.constant 0.000000e+00 : f32
    %23 = vector.broadcast %cst_17 : f32 to vector<2x128xf32>
    %24 = arith.maximumf %22, %23 : vector<2x128xf32>
    %25 = arith.truncf %24 : vector<2x128xf32> to vector<2x128xbf16>
    %c0_18 = arith.constant 0 : index
    %c0_19 = arith.constant 0 : index
    %26 = vector.load %arg8[%c0_18, %c0_19] : memref<128x1024xbf16, #tpu.memory_space<vmem>>, vector<128x1024xbf16>
    %cst_20 = arith.constant dense<0.000000e+00> : vector<2x1024xf32>
    %27 = tpu.matmul %25, %26, %cst_20 {dimension_numbers = #tpu.dot_dimension_numbers<[1], [0], [0], [1], [0, 0, 1, 1], [], []>} : vector<2x128xbf16>, vector<128x1024xbf16>, vector<2x1024xf32> -> vector<2x1024xf32>
    %c0_21 = arith.constant 0 : index
    %c0_22 = arith.constant 0 : index
    %28 = vector.load %arg9[%c0_21, %c0_22] : memref<1x1024xf32, #tpu.memory_space<vmem>>, vector<1x1024xf32>
    %29 = vector.broadcast %28 : vector<1x1024xf32> to vector<2x1024xf32>
    %30 = arith.addf %27, %29 : vector<2x1024xf32>
    %cst_23 = arith.constant 5.000000e-01 : f32
    %31 = vector.broadcast %cst_23 : f32 to vector<2x1024xf32>
    %32 = arith.mulf %31, %30 : vector<2x1024xf32>
    %33 = math.tanh %32 : vector<2x1024xf32>
    %cst_24 = arith.constant 1.000000e+00 : f32
    %34 = vector.broadcast %cst_24 : f32 to vector<2x1024xf32>
    %35 = arith.addf %33, %34 : vector<2x1024xf32>
    %cst_25 = arith.constant 5.000000e-01 : f32
    %36 = vector.broadcast %cst_25 : f32 to vector<2x1024xf32>
    %37 = arith.mulf %36, %35 : vector<2x1024xf32>
    %c0_26 = arith.constant 0 : index
    %c0_27 = arith.constant 0 : index
    %38 = vector.load %arg10[%c0_26, %c0_27] : memref<2x1024xf32, #tpu.memory_space<vmem>>, vector<2x1024xf32>
    tpu.vector_store %arg10[%c0_26, %c0_27], %37 {strides = array<i32>} : memref<2x1024xf32, #tpu.memory_space<vmem>>, vector<2x1024xf32>,
    return
  }
  func.func @transform_0(%arg0: i32) -> (i32, i32) {
    %c0_i32 = arith.constant 0 : i32
    %c0_i32_0 = arith.constant 0 : i32
    return %arg0, %c0_i32 : i32, i32
  }
  func.func @transform_1(%arg0: i32) -> (i32, i32) {
    %c0_i32 = arith.constant 0 : i32
    %c0_i32_0 = arith.constant 0 : i32
    %c0_i32_1 = arith.constant 0 : i32
    return %c0_i32, %c0_i32_0 : i32, i32
  }
  func.func @transform_2(%arg0: i32) -> (i32, i32) {
    %c0_i32 = arith.constant 0 : i32
    %c0_i32_0 = arith.constant 0 : i32
    %c0_i32_1 = arith.constant 0 : i32
    return %c0_i32, %c0_i32_0 : i32, i32
  }
  func.func @transform_3(%arg0: i32) -> (i32, i32) {
    %c0_i32 = arith.constant 0 : i32
    %c0_i32_0 = arith.constant 0 : i32
    %c0_i32_1 = arith.constant 0 : i32
    return %c0_i32, %c0_i32_0 : i32, i32
  }
  func.func @transform_4(%arg0: i32) -> (i32, i32) {
    %c0_i32 = arith.constant 0 : i32
    %c0_i32_0 = arith.constant 0 : i32
    %c0_i32_1 = arith.constant 0 : i32
    return %c0_i32, %c0_i32_0 : i32, i32
  }
  func.func @transform_5(%arg0: i32) -> (i32, i32) {
    %c0_i32 = arith.constant 0 : i32
    %c0_i32_0 = arith.constant 0 : i32
    %c0_i32_1 = arith.constant 0 : i32
    return %c0_i32, %c0_i32_0 : i32, i32
  }
  func.func @transform_6(%arg0: i32) -> (i32, i32) {
    %c0_i32 = arith.constant 0 : i32
    %c0_i32_0 = arith.constant 0 : i32
    %c0_i32_1 = arith.constant 0 : i32
    return %c0_i32, %c0_i32_0 : i32, i32
  }
  func.func @transform_7(%arg0: i32) -> (i32, i32) {
    %c0_i32 = arith.constant 0 : i32
    %c0_i32_0 = arith.constant 0 : i32
    %c0_i32_1 = arith.constant 0 : i32
    return %c0_i32, %c0_i32_0 : i32, i32
  }
  func.func @transform_8(%arg0: i32) -> (i32, i32) {
    %c0_i32 = arith.constant 0 : i32
    %c0_i32_0 = arith.constant 0 : i32
    %c0_i32_1 = arith.constant 0 : i32
    return %c0_i32, %c0_i32_0 : i32, i32
  }
  func.func @transform_9(%arg0: i32) -> (i32, i32) {
    %c0_i32 = arith.constant 0 : i32
    %c0_i32_0 = arith.constant 0 : i32
    return %arg0, %c0_i32 : i32, i32
  }
}

module attributes {stable_mosaic.version = 11 : i64} {
  func.func @ae_kernel(%arg0: i32, %arg1: memref<2x1024xf32, #tpu.memory_space<vmem>>, %arg2: memref<1024x128xbf16, #tpu.memory_space<vmem>>, %arg3: memref<1x128xf32, #tpu.memory_space<vmem>>, %arg4: memref<128x32xbf16, #tpu.memory_space<vmem>>, %arg5: memref<1x32xf32, #tpu.memory_space<vmem>>, %arg6: memref<32x128xbf16, #tpu.memory_space<vmem>>, %arg7: memref<1x128xf32, #tpu.memory_space<vmem>>, %arg8: memref<128x1024xbf16, #tpu.memory_space<vmem>>, %arg9: memref<1x1024xf32, #tpu.memory_space<vmem>>, %arg10: memref<2x1024xf32, #tpu.memory_space<vmem>>) attributes {dimension_semantics = [#tpu.dimension_semantics<parallel>], iteration_bounds = array<i64: 1>, scalar_prefetch = 0 : i64, scratch_operands = 0 : i64, tpu.core_type = #tpu.core_type<tc>, window_params = [{transform_indices = @transform_0, window_bounds = array<i64: 2, 1024>}, {pipeline_mode = #tpu.pipeline_mode<synchronous>, transform_indices = @transform_1, window_bounds = array<i64: 1024, 128>}, {pipeline_mode = #tpu.pipeline_mode<synchronous>, transform_indices = @transform_2, window_bounds = array<i64: 1, 128>}, {pipeline_mode = #tpu.pipeline_mode<synchronous>, transform_indices = @transform_3, window_bounds = array<i64: 128, 32>}, {pipeline_mode = #tpu.pipeline_mode<synchronous>, transform_indices = @transform_4, window_bounds = array<i64: 1, 32>}, {pipeline_mode = #tpu.pipeline_mode<synchronous>, transform_indices = @transform_5, window_bounds = array<i64: 32, 128>}, {pipeline_mode = #tpu.pipeline_mode<synchronous>, transform_indices = @transform_6, window_bounds = array<i64: 1, 128>}, {pipeline_mode = #tpu.pipeline_mode<synchronous>, transform_indices = @transform_7, window_bounds = array<i64: 128, 1024>}, {pipeline_mode = #tpu.pipeline_mode<synchronous>, transform_indices = @transform_8, window_bounds = array<i64: 1, 1024>}, {transform_indices = @transform_9, window_bounds = array<i64: 2, 1024>}]} {
    %c0 = arith.constant 0 : index
    %c0_0 = arith.constant 0 : index
    %0 = vector.load %arg1[%c0, %c0_0] : memref<2x1024xf32, #tpu.memory_space<vmem>>, vector<2x1024xf32>
    %1 = arith.truncf %0 : vector<2x1024xf32> to vector<2x1024xbf16>
    %c0_1 = arith.constant 0 : index
    %c0_2 = arith.constant 0 : index
    %2 = vector.load %arg2[%c0_1, %c0_2] : memref<1024x128xbf16, #tpu.memory_space<vmem>>, vector<1024x128xbf16>
    %cst = arith.constant dense<0.000000e+00> : vector<2x128xf32>
    %3 = tpu.matmul %1, %2, %cst {dimension_numbers = #tpu.dot_dimension_numbers<[1], [0], [0], [1], [0, 0, 1, 1], [], []>} : vector<2x1024xbf16>, vector<1024x128xbf16>, vector<2x128xf32> -> vector<2x128xf32>
    %c0_3 = arith.constant 0 : index
    %c0_4 = arith.constant 0 : index
    %4 = vector.load %arg3[%c0_3, %c0_4] : memref<1x128xf32, #tpu.memory_space<vmem>>, vector<1x128xf32>
    %5 = vector.broadcast %4 : vector<1x128xf32> to vector<2x128xf32>
    %6 = arith.addf %3, %5 : vector<2x128xf32>
    %cst_5 = arith.constant 0.000000e+00 : f32
    %7 = vector.broadcast %cst_5 : f32 to vector<2x128xf32>
    %8 = arith.maximumf %6, %7 : vector<2x128xf32>
    %9 = arith.truncf %8 : vector<2x128xf32> to vector<2x128xbf16>
    %c0_6 = arith.constant 0 : index
    %c0_7 = arith.constant 0 : index
    %10 = vector.load %arg4[%c0_6, %c0_7] : memref<128x32xbf16, #tpu.memory_space<vmem>>, vector<128x32xbf16>
    %cst_8 = arith.constant dense<0.000000e+00> : vector<2x32xf32>
    %11 = tpu.matmul %9, %10, %cst_8 {dimension_numbers = #tpu.dot_dimension_numbers<[1], [0], [0], [1], [0, 0, 1, 1], [], []>} : vector<2x128xbf16>, vector<128x32xbf16>, vector<2x32xf32> -> vector<2x32xf32>
    %c0_9 = arith.constant 0 : index
    %c0_10 = arith.constant 0 : index
    %12 = vector.load %arg5[%c0_9, %c0_10] : memref<1x32xf32, #tpu.memory_space<vmem>>, vector<1x32xf32>
    %13 = vector.broadcast %12 : vector<1x32xf32> to vector<2x32xf32>
    %14 = arith.addf %11, %13 : vector<2x32xf32>
    %cst_11 = arith.constant 0.000000e+00 : f32
    %15 = vector.broadcast %cst_11 : f32 to vector<2x32xf32>
    %16 = arith.maximumf %14, %15 : vector<2x32xf32>
    %17 = arith.truncf %16 : vector<2x32xf32> to vector<2x32xbf16>
    %c0_12 = arith.constant 0 : index
    %c0_13 = arith.constant 0 : index
    %18 = vector.load %arg6[%c0_12, %c0_13] : memref<32x128xbf16, #tpu.memory_space<vmem>>, vector<32x128xbf16>
    %cst_14 = arith.constant dense<0.000000e+00> : vector<2x128xf32>
    %19 = tpu.matmul %17, %18, %cst_14 {dimension_numbers = #tpu.dot_dimension_numbers<[1], [0], [0], [1], [0, 0, 1, 1], [], []>} : vector<2x32xbf16>, vector<32x128xbf16>, vector<2x128xf32> -> vector<2x128xf32>
    %c0_15 = arith.constant 0 : index
    %c0_16 = arith.constant 0 : index
    %20 = vector.load %arg7[%c0_15, %c0_16] : memref<1x128xf32, #tpu.memory_space<vmem>>, vector<1x128xf32>
    %21 = vector.broadcast %20 : vector<1x128xf32> to vector<2x128xf32>
    %22 = arith.addf %19, %21 : vector<2x128xf32>
    %cst_17 = arith.constant 0.000000e+00 : f32
    %23 = vector.broadcast %cst_17 : f32 to vector<2x128xf32>
    %24 = arith.maximumf %22, %23 : vector<2x128xf32>
    %25 = arith.truncf %24 : vector<2x128xf32> to vector<2x128xbf16>
    %c0_18 = arith.constant 0 : index
    %c0_19 = arith.constant 0 : index
    %26 = vector.load %arg8[%c0_18, %c0_19] : memref<128x1024xbf16, #tpu.memory_space<vmem>>, vector<128x1024xbf16>
    %cst_20 = arith.constant dense<0.000000e+00> : vector<2x1024xf32>
    %27 = tpu.matmul %25, %26, %cst_20 {dimension_numbers = #tpu.dot_dimension_numbers<[1], [0], [0], [1], [0, 0, 1, 1], [], []>} : vector<2x128xbf16>, vector<128x1024xbf16>, vector<2x1024xf32> -> vector<2x1024xf32>
    %c0_21 = arith.constant 0 : index
    %c0_22 = arith.constant 0 : index
    %28 = vector.load %arg9[%c0_21, %c0_22] : memref<1x1024xf32, #tpu.memory_space<vmem>>, vector<1x1024xf32>
    %29 = vector.broadcast %28 : vector<1x1024xf32> to vector<2x1024xf32>
    %30 = arith.addf %27, %29 : vector<2x1024xf32>
    %cst_23 = arith.constant 5.000000e-01 : f32
    %31 = vector.broadcast %cst_23 : f32 to vector<2x1024xf32>
    %32 = arith.mulf %31, %30 : vector<2x1024xf32>
    %33 = math.tanh %32 : vector<2x1024xf32>
    %cst_24 = arith.constant 1.000000e+00 : f32
    %34 = vector.broadcast %cst_24 : f32 to vector<2x1024xf32>
    %35 = arith.addf %33, %34 : vector<2x1024xf32>
    %cst_25 = arith.constant 5.000000e-01 : f32
    %36 = vector.broadcast %cst_25 : f32 to vector<2x1024xf32>
    %37 = arith.mulf %36, %35 : vector<2x1024xf32>
    %c0_26 = arith.constant 0 : index
    %c0_27 = arith.constant 0 : index
    %38 = vector.load %arg10[%c0_26, %c0_27] : memref<2x1024xf32, #tpu.memory_space<vmem>>, vector<2x1024xf32>
    tpu.vector_store %arg10[%c0_26, %c0_27], %37 {strides = array<i32>} : memref<2x1024xf32, #tpu.memory_space<vmem>>, vector<2x1024xf32>,
    return
  }
  func.func @transform_0(%arg0: i32) -> (i32, i32) {
    %c0_i32 = arith.constant 0 : i32
    %c0_i32_0 = arith.constant 0 : i32
    return %arg0, %c0_i32 : i32, i32
  }
  func.func @transform_1(%arg0: i32) -> (i32, i32) {
    %c0_i32 = arith.constant 0 : i32
    %c0_i32_0 = arith.constant 0 : i32
    %c0_i32_1 = arith.constant 0 : i32
    return %c0_i32, %c0_i32_0 : i32, i32
  }
  func.func @transform_2(%arg0: i32) -> (i32, i32) {
    %c0_i32 = arith.constant 0 : i32
    %c0_i32_0 = arith.constant 0 : i32
    %c0_i32_1 = arith.constant 0 : i32
    return %c0_i32, %c0_i32_0 : i32, i32
  }
  func.func @transform_3(%arg0: i32) -> (i32, i32) {
    %c0_i32 = arith.constant 0 : i32
    %c0_i32_0 = arith.constant 0 : i32
    %c0_i32_1 = arith.constant 0 : i32
    return %c0_i32, %c0_i32_0 : i32, i32
  }
  func.func @transform_4(%arg0: i32) -> (i32, i32) {
    %c0_i32 = arith.constant 0 : i32
    %c0_i32_0 = arith.constant 0 : i32
    %c0_i32_1 = arith.constant 0 : i32
    return %c0_i32, %c0_i32_0 : i32, i32
  }
  func.func @transform_5(%arg0: i32) -> (i32, i32) {
    %c0_i32 = arith.constant 0 : i32
    %c0_i32_0 = arith.constant 0 : i32
    %c0_i32_1 = arith.constant 0 : i32
    return %c0_i32, %c0_i32_0 : i32, i32
  }
  func.func @transform_6(%arg0: i32) -> (i32, i32) {
    %c0_i32 = arith.constant 0 : i32
    %c0_i32_0 = arith.constant 0 : i32
    %c0_i32_1 = arith.constant 0 : i32
    return %c0_i32, %c0_i32_0 : i32, i32
  }
  func.func @transform_7(%arg0: i32) -> (i32, i32) {
    %c0_i32 = arith.constant 0 : i32
    %c0_i32_0 = arith.constant 0 : i32
    %c0_i32_1 = arith.constant 0 : i32
    return %c0_i32, %c0_i32_0 : i32, i32
  }
  func.func @transform_8(%arg0: i32) -> (i32, i32) {
    %c0_i32 = arith.constant 0 : i32
    %c0_i32_0 = arith.constant 0 : i32
    %c0_i32_1 = arith.constant 0 : i32
    return %c0_i32, %c0_i32_0 : i32, i32
  }
  func.func @transform_9(%arg0: i32) -> (i32, i32) {
    %c0_i32 = arith.constant 0 : i32
    %c0_i32_0 = arith.constant 0 : i32
    return %arg0, %c0_i32 : i32, i32
  }
}

</mosaic_0001>

<bundles_post_ra>
// kernel: tpu_custom_call.1
= control target key start
LH: loop header
LB: loop body
LE: loop exit
PB: predicated region body
PF: predicated region fallthrough
CT: control target
= control target key end

     0   :  { %14 = vsyncpa [#allocation3], 0  ;;  %s2340_s0 = inlined_call_operand.vmem [shape: f32[2,1024], index: 0, kind: input, shape index: {}]   ;;  %s2341_s1 = inlined_call_operand.hbm [shape: bf16[1024,128], index: 1, kind: input, shape index: {}]   ;;  %s2342_s2 = inlined_call_operand.vmem [shape: f32[1,128], index: 2, kind: input, shape index: {}]   ;;  %s2343_s3 = inlined_call_operand.vmem [shape: bf16[128,32], index: 3, kind: input, shape index: {}]   ;;  %s2344_s4 = inlined_call_operand.vmem [shape: f32[1,32], index: 4, kind: input, shape index: {}]   ;;  %s2345_s5 = inlined_call_operand.vmem [shape: bf16[32,128], index: 5, kind: input, shape index: {}]   ;;  %s2346_s6 = inlined_call_operand.vmem [shape: f32[1,128], index: 6, kind: input, shape index: {}]   ;;  %s2347_s7 = inlined_call_operand.hbm [shape: bf16[128,1024], index: 7, kind: input, shape index: {}]   ;;  %s2348_s8 = inlined_call_operand.vmem [shape: f32[1,1024], index: 8, kind: input, shape index: {}]   ;;  %s2349_s9 = inlined_call_operand.hbm [shape: f32[2,1024], index: 9, kind: output, shape index: {}]  }
   0x1   :  { %15 = vsyncpa [#allocation6], 0 }
   0x2   :  { %16 = vsyncpa [#allocation4], 0  ;;  %s23_s11 = sshll.u32 %s2341_s1, 4  ;;  %s2219_s12 = smov [#allocation2]   ;;  %s24_s11 = int_to_ptr.hbm [resolvable:$true] %s23_s11 }
   0x3   :  { %s25_s13 = sshll.u32 %s2219_s12, 4  ;;  %s46_s16 = sshll.u32 %s2347_s7, 4  ;;  %s26_s13 = int_to_ptr.vmem [resolvable:$true] %s25_s13  ;;  %s47_s16 = int_to_ptr.hbm [resolvable:$true] %s46_s16 }
   0x4   :  { %s2220_s17 = smov 64   ;;  %s2221_s18 = smov 4  }
   0x5   :  { %31 = dma.hbm_to_vmem [thread:$0]  %s24_s11, 8192, %s26_s13, [#allocation3], %s2220_s17, %s2220_s17, %s2221_s18  }
   0x6   :  { %s2222_s19 = smov [#allocation5]   ;;  %s2223_s21 = smov 512  }
   0x7   :  { %s48_s20 = sshll.u32 %s2222_s19, 4  ;;  %s2224_s22 = smov 32   ;;  %s49_s20 = int_to_ptr.vmem [resolvable:$true] %s48_s20 }
   0x8   :  { %54 = dma.hbm_to_vmem [thread:$0]  %s47_s16, 8192, %s49_s20, [#allocation6], %s2223_s21, %s2223_s21, %s2224_s22  }
   0x9   :  { %2213 = dma.done.wait [#allocation3], 8192  }
   0xa   :  { %2214 = vsyncadd [#allocation3], 4294959104 }
   0xb   :  { %2215 = dma.done.wait [#allocation6], 8192  }
   0xc   :  { %2216 = vsyncadd [#allocation6], 4294959104  ;;  %v1984_v0 = vld [vmem:[#allocation2 + $0x38] sm:$0xff]  ;;  %v1983_v4 = vld [vmem:[#allocation2 + $0x30] sm:$0xff]  ;;  %vm822_vm0 = vcmask 261120   ;;  %vm1395_vm1 = vcmask 1045508  }
   0xd   :  { %v1992_v1 = vld [vmem:[#allocation2 + $0x78] sm:$0xff]  ;;  %613 = vmatpush.bf16.msra.mxu0 %v1984_v0  ;;  %v1991_v5 = vld [vmem:[#allocation2 + $0x70] sm:$0xff]  ;;  %v1982_v8 = vld [vmem:[#allocation2 + $0x28] sm:$0xff]  ;;  %vm1393_vm2 = vcmask 1041408   ;;  %vm1397_vm3 = vcmask 1043456   ;;  %s1413_s26 = sshll.u32 %s2349_s9, 4  ;;  %s1414_s26 = int_to_ptr.hbm [resolvable:$true] %s1413_s26 }
   0xe   :  { %v2000_v2 = vld [vmem:[#allocation2 + $0xb8] sm:$0xff]  ;;  %626 = vmatpush.bf16.msra.mxu1 %v1992_v1  ;;  %v1999_v6 = vld [vmem:[#allocation2 + $0xb0] sm:$0xff]  ;;  %v1990_v9 = vld [vmem:[#allocation2 + $0x68] sm:$0xff] }
   0xf   :  { %v2008_v3 = vld [vmem:[#allocation2 + $0xf8] sm:$0xff]  ;;  %639 = vmatpush.bf16.msra.mxu2 %v2000_v2  ;;  %v2007_v7 = vld [vmem:[#allocation2 + $0xf0] sm:$0xff]  ;;  %v1998_v10 = vld [vmem:[#allocation2 + $0xa8] sm:$0xff] }
  0x10   :  { %652 = vmatpush.bf16.msra.mxu3 %v2008_v3  ;;  %v2006_v11 = vld [vmem:[#allocation2 + $0xe8] sm:$0xff]  ;;  %v1981_v12 = vld [vmem:[#allocation2 + $0x20] sm:$0xff]  ;;  %v66_v16 = vld [vmem:[%s2340_s0] sm:$0xff] }
  0x11   :  { %614 = vmatpush.bf16.msra.mxu0 %v1983_v4  ;;  %v1989_v13 = vld [vmem:[#allocation2 + $0x60] sm:$0xff]  ;;  %v1980_v17 = vld [vmem:[#allocation2 + $0x18] sm:$0xff]  ;;  %70 = vst [vmem:[#allocation1] ss:$4 sm:$0xff] %v66_v16  ;;  %v1979_v21 = vld [vmem:[#allocation2 + $0x10] sm:$0xff] }
  0x12   :  { %627 = vmatpush.bf16.msra.mxu1 %v1991_v5  ;;  %v1997_v14 = vld [vmem:[#allocation2 + $0xa0] sm:$0xff]  ;;  %v1988_v18 = vld [vmem:[#allocation2 + $0x58] sm:$0xff]  ;;  %v1987_v22 = vld [vmem:[#allocation2 + $0x50] sm:$0xff] }
  0x13   :  { %640 = vmatpush.bf16.msra.mxu2 %v1999_v6  ;;  %v2005_v15 = vld [vmem:[#allocation2 + $0xe0] sm:$0xff]  ;;  %v1996_v19 = vld [vmem:[#allocation2 + $0x98] sm:$0xff]  ;;  %v1995_v23 = vld [vmem:[#allocation2 + $0x90] sm:$0xff] }
  0x14   :  { %653 = vmatpush.bf16.msra.mxu3 %v2007_v7  ;;  %v2004_v20 = vld [vmem:[#allocation2 + $0xd8] sm:$0xff]  ;;  %v2003_v24 = vld [vmem:[#allocation2 + $0xd0] sm:$0xff]  ;;  %v1978_v25 = vld [vmem:[#allocation2 + $0x8] sm:$0xff] }
  0x15   :  { %615 = vmatpush.bf16.msra.mxu0 %v1982_v8  ;;  %v1986_v26 = vld [vmem:[#allocation2 + $0x48] sm:$0xff]  ;;  %v67_v29 = vld [vmem:[%s2340_s0 + $0x8] sm:$0xff]  ;;  %v2016_v34 = vld [vmem:[#allocation2 + $0x138] sm:$0xff] }
  0x16   :  { %628 = vmatpush.bf16.msra.mxu1 %v1990_v9  ;;  %v1994_v27 = vld [vmem:[#allocation2 + $0x88] sm:$0xff]  ;;  %v1977_v30 = vld [vmem:[#allocation2] sm:$0xff]  ;;  %72 = vst [vmem:[#allocation1 + $0x20] ss:$4 sm:$0xff] %v67_v29  ;;  %v2024_v35 = vld [vmem:[#allocation2 + $0x178] sm:$0xff] }
  0x17   :  { %641 = vmatpush.bf16.msra.mxu2 %v1998_v10  ;;  %v2002_v28 = vld [vmem:[#allocation2 + $0xc8] sm:$0xff]  ;;  %v1985_v31 = vld [vmem:[#allocation2 + $0x40] sm:$0xff]  ;;  %v2032_v40 = vld [vmem:[#allocation2 + $0x1b8] sm:$0xff] }
  0x18   :  { %654 = vmatpush.bf16.msra.mxu3 %v2006_v11  ;;  %v1993_v32 = vld [vmem:[#allocation2 + $0x80] sm:$0xff]  ;;  %v75_v36 = vld.sshfl [vmem:[#allocation1 + $0x10] sm:$0xff pattern:$0x73625140]  ;;  %v2040_v41 = vld [vmem:[#allocation2 + $0x1f8] sm:$0xff] }
  0x19   :  { %616 = vmatpush.bf16.msra.mxu0 %v1981_v12  ;;  %v2001_v33 = vld [vmem:[#allocation2 + $0xc0] sm:$0xff]  ;;  %v73_v37 = vld.sshfl [vmem:[#allocation1] sm:$0xff pattern:$0x73625140]  ;;  %v91_v42 = vpack.c.bf16 %v75_v36, %v75_v36  ;;  %v2015_v46 = vld [vmem:[#allocation2 + $0x130] sm:$0xff] }
  0x1a   :  { %629 = vmatpush.bf16.msra.mxu1 %v1989_v13  ;;  %v76_v38 = vld.sshfl [vmem:[#allocation1 + $0x18] sm:$0xff pattern:$0x73625140]  ;;  %v74_v39 = vld.sshfl [vmem:[#allocation1 + $0x8] sm:$0xff pattern:$0x73625140]  ;;  %v89_v43 = vpack.c.bf16 %v73_v37, %v73_v37 }
  0x1b   :  { %642 = vmatpush.bf16.msra.mxu2 %v1997_v14  ;;  %v92_v44 = vpack.c.bf16 %v76_v38, %v76_v38  ;;  %v90_v45 = vpack.c.bf16 %v74_v39, %v74_v39  ;;  %v2023_v47 = vld [vmem:[#allocation2 + $0x170] sm:$0xff]  ;;  %v2014_v50 = vld [vmem:[#allocation2 + $0x128] sm:$0xff]  ;;  %v2013_v54 = vld [vmem:[#allocation2 + $0x120] sm:$0xff] }
  0x1c   :  { %655 = vmatpush.bf16.msra.mxu3 %v2005_v15  ;;  %v2031_v48 = vld [vmem:[#allocation2 + $0x1b0] sm:$0xff]  ;;  %v2022_v51 = vld [vmem:[#allocation2 + $0x168] sm:$0xff]  ;;  %v2021_v55 = vld [vmem:[#allocation2 + $0x160] sm:$0xff] }
  0x1d   :  { %617 = vmatpush.bf16.msra.mxu0 %v1980_v17  ;;  %v2039_v49 = vld [vmem:[#allocation2 + $0x1f0] sm:$0xff]  ;;  %v2030_v52 = vld [vmem:[#allocation2 + $0x1a8] sm:$0xff]  ;;  %v2029_v56 = vld [vmem:[#allocation2 + $0x1a0] sm:$0xff] }
  0x1e   :  { %630 = vmatpush.bf16.msra.mxu1 %v1988_v18  ;;  %v2038_v53 = vld [vmem:[#allocation2 + $0x1e8] sm:$0xff]  ;;  %v2037_v57 = vld [vmem:[#allocation2 + $0x1e0] sm:$0xff]  ;;  %v2012_v58 = vld [vmem:[#allocation2 + $0x118] sm:$0xff] }
  0x1f   :  { %643 = vmatpush.bf16.msra.mxu2 %v1996_v19  ;;  %v2020_v59 = vld [vmem:[#allocation2 + $0x158] sm:$0xff]  ;;  %v2011_v62 = vld [vmem:[#allocation2 + $0x110] sm:$0xff]  ;;  %v2010_v2 = vld [vmem:[#allocation2 + $0x108] sm:$0xff] }
  0x20   :  { %656 = vmatpush.bf16.msra.mxu3 %v2004_v20  ;;  %v2028_v60 = vld [vmem:[#allocation2 + $0x198] sm:$0xff]  ;;  %v2019_v63 = vld [vmem:[#allocation2 + $0x150] sm:$0xff]  ;;  %v2018_v3 = vld [vmem:[#allocation2 + $0x148] sm:$0xff] }
  0x21   :  { %618 = vmatpush.bf16.msra.mxu0 %v1979_v21  ;;  %v2036_v61 = vld [vmem:[#allocation2 + $0x1d8] sm:$0xff]  ;;  %v2027_v0 = vld [vmem:[#allocation2 + $0x190] sm:$0xff]  ;;  %v2026_v4 = vld [vmem:[#allocation2 + $0x188] sm:$0xff] }
  0x22   :  { %631 = vmatpush.bf16.msra.mxu1 %v1987_v22  ;;  %v2035_v1 = vld [vmem:[#allocation2 + $0x1d0] sm:$0xff]  ;;  %v2034_v5 = vld [vmem:[#allocation2 + $0x1c8] sm:$0xff]  ;;  %v2009_v6 = vld [vmem:[#allocation2 + $0x100] sm:$0xff] }
  0x23   :  { %644 = vmatpush.bf16.msra.mxu2 %v1995_v23  ;;  %v2017_v7 = vld [vmem:[#allocation2 + $0x140] sm:$0xff]  ;;  %v77_v10 = vld.sshfl [vmem:[#allocation1 + $0x20] sm:$0xff pattern:$0x73625140]  ;;  %v2048_v18 = vld [vmem:[%s2343_s3 + $0x38] sm:$0xff] }
  0x24   :  { %657 = vmatpush.bf16.msra.mxu3 %v2003_v24  ;;  %v2025_v8 = vld [vmem:[#allocation2 + $0x180] sm:$0xff]  ;;  %v79_v12 = vld.sshfl [vmem:[#allocation1 + $0x30] sm:$0xff pattern:$0x73625140]  ;;  %v93_v14 = vpack.c.bf16 %v77_v10, %v77_v10  ;;  %v2045_v21 = vld [vmem:[%s2343_s3 + $0x20] sm:$0xff] }
  0x25   :  { %619 = vmatpush.bf16.msra.mxu0 %v1978_v25  ;;  %v2033_v9 = vld [vmem:[#allocation2 + $0x1c0] sm:$0xff]  ;;  %v80_v13 = vld.sshfl [vmem:[#allocation1 + $0x38] sm:$0xff pattern:$0x73625140]  ;;  %v95_v16 = vpack.c.bf16 %v79_v12, %v79_v12  ;;  %v2047_v19 = vld [vmem:[%s2343_s3 + $0x30] sm:$0xff] }
  0x26   :  { %632 = vmatpush.bf16.msra.mxu1 %v1986_v26  ;;  %v78_v11 = vld.sshfl [vmem:[#allocation1 + $0x28] sm:$0xff pattern:$0x73625140]  ;;  %v96_v17 = vpack.c.bf16 %v80_v13, %v80_v13  ;;  %v2044_v22 = vld [vmem:[%s2343_s3 + $0x18] sm:$0xff]  ;;  %v2043_v24 = vld [vmem:[%s2343_s3 + $0x10] sm:$0xff] }
  0x27   :  { %645 = vmatpush.bf16.msra.mxu2 %v1994_v27  ;;  %v94_v15 = vpack.c.bf16 %v78_v11, %v78_v11  ;;  %v2046_v20 = vld [vmem:[%s2343_s3 + $0x28] sm:$0xff]  ;;  %v2049_v36 = vld [vmem:[%s2345_s5] sm:$0xff]  ;;  %v2104_v10 = vld [vmem:[#allocation5 + $0x1a4] sm:$0xf0] }
  0x28   :  { %658 = vmatpush.bf16.msra.mxu3 %v2002_v28  ;;  %v2042_v26 = vld [vmem:[%s2343_s3 + $0x8] sm:$0xff]  ;;  %v2100_v11 = vld [vmem:[#allocation5 + $0x18c] sm:$0xf] }
  0x29   :  { %620 = vmatpush.bf16.msra.mxu0 %v1977_v30  ;;  %v2041_v30 = vld [vmem:[%s2343_s3] sm:$0xff]  ;;  %v1925_v13 = vld [vmem:[#allocation5 + $0x1a8] sm:$0xf0] }
  0x2a   :  { %633 = vmatpush.bf16.msra.mxu1 %v1985_v31 }
  0x2b   :  { %646 = vmatpush.bf16.msra.mxu2 %v1993_v32  ;;  %v2122_v32 = vld [vmem:[%s2342_s2] ss:$0 sm:$0xff] }
  0x2c   :  { %659 = vmatpush.bf16.msra.mxu3 %v2001_v33  ;;  %621 = vmatmul.bf16.vlgmr.msra.gmra.mxu0 %v89_v43  ;;  %v2050_v33 = vld [vmem:[%s2345_s5 + $0x8] sm:$0xff] }
  0x2d   :  { %665 = vmatpush.bf16.msrb.mxu0 %v2016_v34  ;;  %634 = vmatmul.bf16.vlgmr.msra.gmra.mxu1 %v90_v45 }
  0x2e   :  { %678 = vmatpush.bf16.msrb.mxu1 %v2024_v35  ;;  %647 = vmatmul.bf16.vlgmr.msra.gmra.mxu2 %v91_v42 }
  0x2f   :  { %691 = vmatpush.bf16.msrb.mxu2 %v2032_v40  ;;  %660 = vmatmul.bf16.vlgmr.msra.gmra.mxu3 %v92_v44 }
  0x30   :  { %704 = vmatpush.bf16.msrb.mxu3 %v2040_v41 }
  0x31   :  { %666 = vmatpush.bf16.msrb.mxu0 %v2015_v46 }
  0x32   :  { %679 = vmatpush.bf16.msrb.mxu1 %v2023_v47 }
  0x33   :  { %692 = vmatpush.bf16.msrb.mxu2 %v2031_v48 }
  0x34   :  { %705 = vmatpush.bf16.msrb.mxu3 %v2039_v49 }
  0x35   :  { %667 = vmatpush.bf16.msrb.mxu0 %v2014_v50 }
  0x36   :  { %680 = vmatpush.bf16.msrb.mxu1 %v2022_v51 }
  0x37   :  { %693 = vmatpush.bf16.msrb.mxu2 %v2030_v52 }
  0x38   :  { %706 = vmatpush.bf16.msrb.mxu3 %v2038_v53 }
  0x39   :  { %668 = vmatpush.bf16.msrb.mxu0 %v2013_v54 }
  0x3a   :  { %681 = vmatpush.bf16.msrb.mxu1 %v2021_v55  ;;  %v1947_v55 = vld [vmem:[#allocation5 + $0x1c0] sm:$0xf] }
  0x3b   :  { %694 = vmatpush.bf16.msrb.mxu2 %v2029_v56  ;;  %v2111_v56 = vld [vmem:[#allocation5 + $0x1dc] sm:$0xf0] }
  0x3c   :  { %707 = vmatpush.bf16.msrb.mxu3 %v2037_v57  ;;  %v2107_v57 = vld [vmem:[#allocation5 + $0x1c4] sm:$0xf] }
  0x3d   :  { %669 = vmatpush.bf16.msrb.mxu0 %v2012_v58  ;;  %v1948_v58 = vor.u32 %v2111_v56, %v1947_v55  ;;  %v1795_v55 = vld [vmem:[#allocation5 + $0x88] sm:$0xf] }
  0x3e   :  { %682 = vmatpush.bf16.msrb.mxu1 %v2020_v59  ;;  %v1949_v59 = vld [vmem:[#allocation5 + $0x1e0] sm:$0xf0]  ;;  %v2072_v56 = vld [vmem:[#allocation5 + $0xa4] sm:$0xf0] }
  0x3f   :  { %695 = vmatpush.bf16.msrb.mxu2 %v2028_v60  ;;  %v1955_v60 = vld [vmem:[#allocation5 + $0x1c8] sm:$0xf] }
  0x40   :  { %708 = vmatpush.bf16.msrb.mxu3 %v2036_v61  ;;  %v2112_v61 = vld [vmem:[#allocation5 + $0x1e4] sm:$0xf0] }
  0x41   :  { %670 = vmatpush.bf16.msrb.mxu0 %v2011_v62  ;;  %v1952_v62 = vor.u32 %v2107_v57, %v1949_v59  ;;  %v2068_v57 = vld [vmem:[#allocation5 + $0x8c] sm:$0xf]  ;;  %v2123_v59 = vld [vmem:[%s2344_s4] ss:$0 sm:$0xff] }
  0x42   :  { %683 = vmatpush.bf16.msrb.mxu1 %v2019_v63  ;;  %v1956_v63 = vor.u32 %v2112_v61, %v1955_v60 }
  0x43   :  { %696 = vmatpush.bf16.msrb.mxu2 %v2027_v0  ;;  %v2108_v0 = vld [vmem:[#allocation5 + $0x1cc] sm:$0xf] }
  0x44   :  { %709 = vmatpush.bf16.msrb.mxu3 %v2035_v1  ;;  %v1957_v1 = vld [vmem:[#allocation5 + $0x1e8] sm:$0xf0] }
  0x45   :  { %671 = vmatpush.bf16.msrb.mxu0 %v2010_v2  ;;  %v1915_v2 = vld [vmem:[#allocation5 + $0x180] sm:$0xf] }
  0x46   :  { %684 = vmatpush.bf16.msrb.mxu1 %v2018_v3  ;;  %v1960_v3 = vor.u32 %v2108_v0, %v1957_v1  ;;  %v2063_v0 = vld [vmem:[#allocation5 + $0x5c] sm:$0xf0]  ;;  %v2059_v1 = vld [vmem:[#allocation5 + $0x44] sm:$0xf] }
  0x47   :  { %697 = vmatpush.bf16.msrb.mxu2 %v2026_v4  ;;  %v2103_v4 = vld [vmem:[#allocation5 + $0x19c] sm:$0xf0] }
  0x48   :  { %710 = vmatpush.bf16.msrb.mxu3 %v2034_v5  ;;  %v2099_v5 = vld [vmem:[#allocation5 + $0x184] sm:$0xf] }
  0x49   :  { %672 = vmatpush.bf16.msrb.mxu0 %v2009_v6  ;;  %v1917_v6 = vld [vmem:[#allocation5 + $0x1a0] sm:$0xf0] }
  0x4a   :  { %685 = vmatpush.bf16.msrb.mxu1 %v2017_v7  ;;  %v1916_v7 = vor.u32 %v2103_v4, %v1915_v2  ;;  %v1763_v4 = vld [vmem:[#allocation5 + $0x48] sm:$0xf] }
  0x4b   :  { %698 = vmatpush.bf16.msrb.mxu2 %v2025_v8  ;;  %v1920_v8 = vor.u32 %v2099_v5, %v1917_v6  ;;  %v2064_v5 = vld [vmem:[#allocation5 + $0x64] sm:$0xf0]  ;;  %v2060_v6 = vld [vmem:[#allocation5 + $0x4c] sm:$0xf] }
  0x4c   :  { %711 = vmatpush.bf16.msrb.mxu3 %v2033_v9  ;;  %673 = vmatmul.bf16.vlgmr.msrb.gmra.mxu0 %v93_v14  ;;  %v1923_v9 = vld [vmem:[#allocation5 + $0x188] sm:$0xf]  ;;  %v1883_v14 = vld [vmem:[#allocation5 + $0x140] sm:$0xf] }
  0x4d   :  { %686 = vmatmul.bf16.vlgmr.msrb.gmra.mxu1 %v94_v15  ;;  %787 = vmatpush.bf16.msra.mxu0 %v2048_v18  ;;  %v1924_v12 = vor.u32 %v2104_v10, %v1923_v9  ;;  %v2095_v15 = vld [vmem:[#allocation5 + $0x15c] sm:$0xf0]  ;;  %v1885_v18 = vld [vmem:[#allocation5 + $0x160] sm:$0xf0] }
  0x4e   :  { %699 = vmatmul.bf16.vlgmr.msrb.gmra.mxu2 %v95_v16  ;;  %832 = vmatpush.bf16.msra.mxu1 %v2050_v33  ;;  %v1928_v16 = vor.u32 %v2100_v11, %v1925_v13  ;;  %v2084_v33 = vld [vmem:[#allocation5 + $0x10c] sm:$0xf]  ;;  %v1723_v9 = vld [vmem:[#allocation5] sm:$0xf]  ;;  %v2051_v11 = vld [vmem:[#allocation5 + $0x4] sm:$0xf] }
  0x4f   :  { %712 = vmatmul.bf16.vlgmr.msrb.gmra.mxu3 %v96_v17  ;;  %1243 = vmatpush.bf16.msra.mxu2 %v1948_v58  ;;  %v2091_v17 = vld [vmem:[#allocation5 + $0x144] sm:$0xf]  ;;  %v1797_v58 = vld [vmem:[#allocation5 + $0xa8] sm:$0xf0]  ;;  %v2055_v10 = vld [vmem:[#allocation5 + $0x1c] sm:$0xf0] }
  0x50   :  { %1256 = vmatpush.bf16.msra.mxu3 %v1952_v62  ;;  %v1796_v62 = vor.u32 %v2072_v56, %v1795_v55  ;;  %v1800_v2 = vor.u32 %v2068_v57, %v1797_v58  ;;  %v2093_v55 = vld [vmem:[#allocation5 + $0x154] sm:$0xf]  ;;  %v1907_v58 = vld [vmem:[#allocation5 + $0x158] sm:$0xf] }
  0x51   :  { %788 = vmatpush.bf16.msra.mxu0 %v2047_v19  ;;  %v1891_v19 = vld [vmem:[#allocation5 + $0x148] sm:$0xf]  ;;  %v1901_v57 = vld [vmem:[#allocation5 + $0x170] sm:$0xf0] }
  0x52   :  { %833 = vmatpush.bf16.msra.mxu1 %v2049_v36 }
  0x53   :  { %1244 = vmatpush.bf16.msra.mxu2 %v1916_v7  ;;  %v1765_v7 = vld [vmem:[#allocation5 + $0x68] sm:$0xf0] }
  0x54   :  { %1257 = vmatpush.bf16.msra.mxu3 %v1920_v8 }
  0x55   :  { %789 = vmatpush.bf16.msra.mxu0 %v2046_v20  ;;  %v1884_v20 = vor.u32 %v2095_v15, %v1883_v14  ;;  %v1764_v14 = vor.u32 %v2064_v5, %v1763_v4  ;;  %v1725_v15 = vld [vmem:[#allocation5 + $0x20] sm:$0xf0]  ;;  %v1869_v5 = vld [vmem:[#allocation5 + $0x130] sm:$0xf0] }
  0x56   :  { %1269 = vmatpush.bf16.msrb.mxu1 %v1956_v63  ;;  %v1755_v63 = vld [vmem:[#allocation5 + $0x40] sm:$0xf] }
  0x57   :  { %1245 = vmatpush.bf16.msra.mxu2 %v1884_v20  ;;  %v1756_v8 = vor.u32 %v2063_v0, %v1755_v63  ;;  %v2052_v20 = vld [vmem:[#allocation5 + $0xc] sm:$0xf]  ;;  %v1909_v63 = vld [vmem:[#allocation5 + $0x178] sm:$0xf0] }
  0x59   :  { %790 = vmatpush.bf16.msra.mxu0 %v2045_v21  ;;  %v2096_v21 = vld [vmem:[#allocation5 + $0x164] sm:$0xf0] }
  0x5a   :  { %1270 = vmatpush.bf16.msrb.mxu1 %v1924_v12 }
  0x5d   :  { %791 = vmatpush.bf16.msra.mxu0 %v2044_v22  ;;  %v2092_v22 = vld [vmem:[#allocation5 + $0x14c] sm:$0xf] }
  0x61   :  { %792 = vmatpush.bf16.msra.mxu0 %v2043_v24  ;;  %v1888_v24 = vor.u32 %v2091_v17, %v1885_v18  ;;  %v2056_v17 = vld [vmem:[#allocation5 + $0x24] sm:$0xf0] }
  0x63   :  { %1258 = vmatpush.bf16.msra.mxu3 %v1888_v24  ;;  %v2109_v24 = vld [vmem:[#allocation5 + $0x1d4] sm:$0xf] }
  0x65   :  { %793 = vmatpush.bf16.msra.mxu0 %v2042_v26  ;;  %v1851_v26 = vld [vmem:[#allocation5 + $0x100] sm:$0xf] }
  0x69   :  { %794 = vmatpush.bf16.msra.mxu0 %v2041_v30  ;;  %v1853_v30 = vld [vmem:[#allocation5 + $0x120] sm:$0xf0] }
  0x6d   :  { %1282 = vmatpush.bf16.msrb.mxu0 %v1960_v3  ;;  %v1757_v3 = vld [vmem:[#allocation5 + $0x60] sm:$0xf0] }
  0x6e   :  { %v1760_v13 = vor.u32 %v2059_v1, %v1757_v3  ;;  %v1867_v1 = vld [vmem:[#allocation5 + $0x110] sm:$0xf]  ;;  %v2085_v3 = vld [vmem:[#allocation5 + $0x114] sm:$0xf] }
  0x71   :  { %1283 = vmatpush.bf16.msrb.mxu0 %v1928_v16  ;;  %v1731_v16 = vld [vmem:[#allocation5 + $0x8] sm:$0xf] }
  0xa9   :  { %v622_v23 = vpop.f32.mrf.mxu0 }
  0xaa   :  { %v635_v25 = vpop.f32.mrf.mxu1  ;;  %v623_v37 = vadd.f32 %v2122_v32, %v622_v23  ;;  %v1893_v23 = vld [vmem:[#allocation5 + $0x168] sm:$0xf0]  ;;  %v2088_v32 = vld [vmem:[#allocation5 + $0x124] sm:$0xf0] }
  0xac   :  { %v636_v38 = vadd.f32 %v635_v25, %v623_v37  ;;  %v1892_v25 = vor.u32 %v2096_v21, %v1891_v19  ;;  %v1768_v19 = vor.u32 %v2060_v6, %v1765_v7  ;;  %v1733_v21 = vld [vmem:[#allocation5 + $0x28] sm:$0xf0]  ;;  %v1875_v6 = vld [vmem:[#allocation5 + $0x118] sm:$0xf] }
  0xad   :  { %v2090_v7 = vld [vmem:[#allocation5 + $0x134] sm:$0xf0] }
  0xae   :  { %1271 = vmatpush.bf16.msrb.mxu1 %v1892_v25  ;;  %v1965_v25 = vld [vmem:[#allocation5 + $0x1f0] sm:$0xf0] }
  0xb1   :  { %v648_v27 = vpop.f32.mrf.mxu2  ;;  %v624_v29 = vpop.f32.mrf.mxu0 }
  0xb2   :  { %v661_v28 = vpop.f32.mrf.mxu3  ;;  %v637_v31 = vpop.f32.mrf.mxu1  ;;  %v649_v39 = vadd.f32 %v648_v27, %v636_v38  ;;  %v2087_v27 = vld [vmem:[#allocation5 + $0x11c] sm:$0xf0]  ;;  %v1896_v29 = vor.u32 %v2092_v22, %v1893_v23  ;;  %v1963_v22 = vld [vmem:[#allocation5 + $0x1d0] sm:$0xf] }
  0xb3   :  { %v1859_v31 = vld [vmem:[#allocation5 + $0x108] sm:$0xf]  ;;  %v1819_v38 = vld [vmem:[#allocation5 + $0xc0] sm:$0xf]  ;;  %v2113_v23 = vld [vmem:[#allocation5 + $0x1ec] sm:$0xf0] }
  0xb4   :  { %v662_v40 = vadd.f32 %v661_v28, %v649_v39  ;;  %v2083_v28 = vld [vmem:[#allocation5 + $0x104] sm:$0xf]  ;;  %v1860_v37 = vor.u32 %v2088_v32, %v1859_v31  ;;  %v2079_v39 = vld [vmem:[#allocation5 + $0xdc] sm:$0xf0]  ;;  %1284 = vmatpush.bf16.msrb.mxu0 %v1896_v29  ;;  %v2114_v29 = vld [vmem:[#allocation5 + $0x1f4] sm:$0xf0]  ;;  %v1732_v31 = vor.u32 %v2056_v17, %v1731_v16 }
  0xb5   :  { %v1856_v36 = vor.u32 %v2083_v28, %v1853_v30  ;;  %v1971_v28 = vld [vmem:[#allocation5 + $0x1d8] sm:$0xf]  ;;  %v1728_v30 = vor.u32 %v2051_v11, %v1725_v15  ;;  %v2110_v32 = vld [vmem:[#allocation5 + $0x1dc] sm:$0xf]  ;;  %v2077_v15 = vld [vmem:[#allocation5 + $0xd4] sm:$0xf] }
  0xb6   :  { %1272 = vmatpush.bf16.msrb.mxu1 %v1860_v37  ;;  %v1968_v37 = vor.u32 %v2109_v24, %v1965_v25  ;;  %v1877_v11 = vld [vmem:[#allocation5 + $0x138] sm:$0xf0]  ;;  %v1837_v17 = vld [vmem:[#allocation5 + $0xf0] sm:$0xf0]  ;;  %v1803_v24 = vld [vmem:[#allocation5 + $0x90] sm:$0xf] }
  0xb7   :  { %1259 = vmatpush.bf16.msra.mxu3 %v1856_v36  ;;  %v1964_v36 = vor.u32 %v2113_v23, %v1963_v22  ;;  %v2078_v22 = vld [vmem:[#allocation5 + $0xdc] sm:$0xf] }
  0xb8   :  { %v1845_v23 = vld [vmem:[#allocation5 + $0xf8] sm:$0xf0] }
  0xb9   :  { %v650_v34 = vpop.f32.mrf.mxu2  ;;  %v1848_v25 = vor.u32 %v2078_v22, %v1845_v23 }
  0xba   :  { %v663_v35 = vpop.f32.mrf.mxu3  ;;  %v1861_v34 = vld [vmem:[#allocation5 + $0x128] sm:$0xf0] }
  0xbb   :  { %v1852_v35 = vor.u32 %v2087_v27, %v1851_v26  ;;  %v1724_v27 = vor.u32 %v2055_v10, %v1723_v9  ;;  %v1876_v9 = vor.u32 %v2090_v7, %v1875_v6  ;;  %v2086_v10 = vld [vmem:[#allocation5 + $0x11c] sm:$0xf] }
  0xbd   :  { %1246 = vmatpush.bf16.msra.mxu2 %v1852_v35  ;;  %v1736_v35 = vor.u32 %v2052_v20, %v1733_v21  ;;  %v1840_v20 = vor.u32 %v2077_v15, %v1837_v17 }
  0xc9   :  { %v674_v41 = vpop.f32.mrf.mxu0 }
  0xca   :  { %v687_v42 = vpop.f32.mrf.mxu1  ;;  %v675_v43 = vadd.f32 %v674_v41, %v662_v40  ;;  %v2075_v40 = vld [vmem:[#allocation5 + $0xc4] sm:$0xf]  ;;  %v1864_v41 = vor.u32 %v2084_v33, %v1861_v34  ;;  %v1973_v33 = vld [vmem:[#allocation5 + $0x1f8] sm:$0xf0] }
  0xcc   :  { %v688_v44 = vadd.f32 %v687_v42, %v675_v43  ;;  %v1821_v42 = vld [vmem:[#allocation5 + $0xe0] sm:$0xf0]  ;;  %v1827_v43 = vld [vmem:[#allocation5 + $0xc8] sm:$0xf]  ;;  %1285 = vmatpush.bf16.msrb.mxu0 %v1864_v41  ;;  %v2101_v41 = vld [vmem:[#allocation5 + $0x194] sm:$0xf] }
  0xd1   :  { %v700_v45 = vpop.f32.mrf.mxu2  ;;  %v676_v48 = vpop.f32.mrf.mxu0 }
  0xd2   :  { %v713_v46 = vpop.f32.mrf.mxu3  ;;  %v701_v47 = vadd.f32 %v700_v45, %v688_v44  ;;  %v689_v49 = vpop.f32.mrf.mxu1  ;;  %v2080_v44 = vld [vmem:[#allocation5 + $0xe4] sm:$0xf0]  ;;  %v2076_v45 = vld [vmem:[#allocation5 + $0xcc] sm:$0xf]  ;;  %v1824_v48 = vor.u32 %v2075_v40, %v1821_v42  ;;  %v2105_v40 = vld [vmem:[#allocation5 + $0x1ac] sm:$0xf0]  ;;  %v1976_v42 = vor.u32 %v2110_v32, %v1973_v33 }
  0xd3   :  { %v1828_v49 = vor.u32 %v2080_v44, %v1827_v43  ;;  %v1933_v43 = vld [vmem:[#allocation5 + $0x1b0] sm:$0xf0]  ;;  %v1939_v44 = vld [vmem:[#allocation5 + $0x198] sm:$0xf]  ;;  %v2070_v33 = vld [vmem:[#allocation5 + $0x9c] sm:$0xf] }
  0xd4   :  { %v714_v50 = vadd.f32 %v713_v46, %v701_v47  ;;  %v1829_v46 = vld [vmem:[#allocation5 + $0xe8] sm:$0xf0]  ;;  %v1820_v47 = vor.u32 %v2079_v39, %v1819_v38  ;;  %1260 = vmatpush.bf16.msra.mxu3 %v1824_v48  ;;  %v1972_v38 = vor.u32 %v2114_v29, %v1971_v28  ;;  %v1931_v39 = vld [vmem:[#allocation5 + $0x190] sm:$0xf]  ;;  %v1941_v48 = vld [vmem:[#allocation5 + $0x1b8] sm:$0xf0] }
  0xd5   :  { %1273 = vmatpush.bf16.msrb.mxu1 %v1828_v49  ;;  %v1932_v49 = vor.u32 %v2105_v40, %v1931_v39  ;;  %v1805_v28 = vld [vmem:[#allocation5 + $0xb0] sm:$0xf0]  ;;  %v2074_v32 = vld [vmem:[#allocation5 + $0xb4] sm:$0xf0] }
  0xd6   :  { %v717_v51 = vmax.f32 %v714_v50, 0.0  ;;  %v1787_v50 = vld [vmem:[#allocation5 + $0x80] sm:$0xf]  ;;  %1247 = vmatpush.bf16.msra.mxu2 %v1820_v47  ;;  %v2102_v47 = vld [vmem:[#allocation5 + $0x19c] sm:$0xf] }
  0xd7   :  { %v2061_v39 = vld [vmem:[#allocation5 + $0x54] sm:$0xf] }
  0xd8   :  { %v718_v52 = vpack.c.bf16 %v717_v51, %v717_v51  ;;  %v2071_v51 = vld [vmem:[#allocation5 + $0x9c] sm:$0xf0]  ;;  %v1773_v40 = vld [vmem:[#allocation5 + $0x70] sm:$0xf0] }
  0xd9   :  { %v702_v53 = vpop.f32.mrf.mxu2  ;;  %v1788_v60 = vor.u32 %v2071_v51, %v1787_v50  ;;  %1274 = vmatpush.bf16.msrb.mxu1 %v1796_v62  ;;  %v1936_v50 = vor.u32 %v2101_v41, %v1933_v43  ;;  %v2094_v62 = vld [vmem:[#allocation5 + $0x15c] sm:$0xf]  ;;  %v1779_v41 = vld [vmem:[#allocation5 + $0x58] sm:$0xf] }
  0xda   :  { %v715_v54 = vpop.f32.mrf.mxu3  ;;  %795 = vmatmul.bf16.vlgmr.msra.gmra.mxu0 %v718_v52  ;;  %v2067_v52 = vld [vmem:[#allocation5 + $0x84] sm:$0xf]  ;;  %v1832_v53 = vor.u32 %v2076_v45, %v1829_v46  ;;  %v2106_v45 = vld [vmem:[#allocation5 + $0x1b4] sm:$0xf0]  ;;  %v1912_v0 = vor.u32 %v2094_v62, %v1909_v63 }
  0xdb   :  { %v1789_v54 = vld [vmem:[#allocation5 + $0xa0] sm:$0xf0]  ;;  %1248 = vmatpush.bf16.msra.mxu2 %v1788_v60  ;;  %v1940_v51 = vor.u32 %v2106_v45, %v1939_v44  ;;  %v1904_v60 = vor.u32 %v2093_v55, %v1901_v57  ;;  %v2066_v43 = vld [vmem:[#allocation5 + $0x74] sm:$0xf0]  ;;  %v2062_v44 = vld [vmem:[#allocation5 + $0x5c] sm:$0xf] }
  0xdc   :  { %v1792_v61 = vor.u32 %v2067_v52, %v1789_v54  ;;  %1286 = vmatpush.bf16.msrb.mxu0 %v1832_v53  ;;  %v1944_v52 = vor.u32 %v2102_v47, %v1941_v48  ;;  %v1899_v53 = vld [vmem:[#allocation5 + $0x150] sm:$0xf]  ;;  %v1781_v45 = vld [vmem:[#allocation5 + $0x78] sm:$0xf0]  ;;  %v1780_v47 = vor.u32 %v2066_v43, %v1779_v41 }
  0xdd   :  { %1275 = vmatpush.bf16.msrb.mxu1 %v1764_v14  ;;  %v2097_v54 = vld [vmem:[#allocation5 + $0x16c] sm:$0xf0]  ;;  %v2054_v55 = vld [vmem:[#allocation5 + $0x1c] sm:$0xf] }
  0xde   :  { %1261 = vmatpush.bf16.msra.mxu3 %v1792_v61  ;;  %v1900_v56 = vor.u32 %v2097_v54, %v1899_v53  ;;  %v2081_v14 = vld [vmem:[#allocation5 + $0xec] sm:$0xf0]  ;;  %v1747_v53 = vld [vmem:[#allocation5 + $0x18] sm:$0xf] }
  0xdf   :  { %1249 = vmatpush.bf16.msra.mxu2 %v1756_v8  ;;  %v1872_v8 = vor.u32 %v2085_v3, %v1869_v5  ;;  %v1739_v48 = vld [vmem:[#allocation5 + $0x10] sm:$0xf]  ;;  %v2058_v54 = vld [vmem:[#allocation5 + $0x34] sm:$0xf0] }
  0xe0   :  { %1287 = vmatpush.bf16.msrb.mxu0 %v1800_v2  ;;  %v2089_v2 = vld [vmem:[#allocation5 + $0x12c] sm:$0xf0]  ;;  %v905_v3 = vld [vmem:[%s2348_s8] sm:$0xff] }
  0xe1   :  { %1276 = vmatpush.bf16.msrb.mxu1 %v1732_v31  ;;  %v1868_v4 = vor.u32 %v2089_v2, %v1867_v1  ;;  %v1811_v31 = vld [vmem:[#allocation5 + $0x98] sm:$0xf]  ;;  %v910_v5 = vperm.slane %v905_v3, 3  ;;  %v912_v41 = vperm.slane %v905_v3, 5 }
  0xe2   :  { %1262 = vmatpush.bf16.msra.mxu3 %v1760_v13  ;;  %v1835_v13 = vld [vmem:[#allocation5 + $0xd0] sm:$0xf] }
  0xe3   :  { %1250 = vmatpush.bf16.msra.mxu2 %v1724_v27  ;;  %v1836_v16 = vor.u32 %v2081_v14, %v1835_v13  ;;  %v2069_v27 = vld [vmem:[#allocation5 + $0x94] sm:$0xf] }
  0xe4   :  { %1288 = vmatpush.bf16.msrb.mxu0 %v1768_v19  ;;  %v2082_v19 = vld [vmem:[#allocation5 + $0xf4] sm:$0xf0] }
  0xe6   :  { %1263 = vmatpush.bf16.msra.mxu3 %v1728_v30  ;;  %v1808_v30 = vor.u32 %v2069_v27, %v1805_v28  ;;  %v913_v28 = vperm.slane %v905_v3, 6 }
  0xe7   :  { %1295 = vmatpush.bf16.msrb.mxu2 %v1964_v36  ;;  %v1771_v36 = vld [vmem:[#allocation5 + $0x50] sm:$0xf] }
  0xe8   :  { %1289 = vmatpush.bf16.msrb.mxu0 %v1736_v35  ;;  %v1813_v35 = vld [vmem:[#allocation5 + $0xb8] sm:$0xf0] }
  0xea   :  { %1308 = vmatpush.bf16.msrb.mxu3 %v1968_v37  ;;  %v2065_v37 = vld [vmem:[#allocation5 + $0x6c] sm:$0xf0] }
  0xeb   :  { %1296 = vmatpush.bf16.msrb.mxu2 %v1932_v49  ;;  %v2057_v49 = vld [vmem:[#allocation5 + $0x2c] sm:$0xf0] }
  0xec   :  { %1334 = vmatpush.bf16.msra.mxu0 %v1976_v42  ;;  %v1772_v42 = vor.u32 %v2065_v37, %v1771_v36  ;;  %v1740_v57 = vor.u32 %v2057_v49, %v1739_v48 }
  0xee   :  { %1309 = vmatpush.bf16.msrb.mxu3 %v1936_v50  ;;  %v2053_v50 = vld [vmem:[#allocation5 + $0x14] sm:$0xf] }
  0xef   :  { %1297 = vmatpush.bf16.msrb.mxu2 %v1900_v56  ;;  %v1749_v56 = vld [vmem:[#allocation5 + $0x38] sm:$0xf0] }
  0xf0   :  { %1335 = vmatpush.bf16.msra.mxu0 %v1944_v52  ;;  %v1741_v52 = vld [vmem:[#allocation5 + $0x30] sm:$0xf0] }
  0xf2   :  { %1310 = vmatpush.bf16.msrb.mxu3 %v1904_v60  ;;  %v1752_v60 = vor.u32 %v2054_v55, %v1749_v56 }
  0xf3   :  { %1298 = vmatpush.bf16.msrb.mxu2 %v1868_v4  ;;  %v909_v4 = vperm.slane %v905_v3, 2 }
  0xf4   :  { %1336 = vmatpush.bf16.msra.mxu0 %v1912_v0 }
  0xf6   :  { %1311 = vmatpush.bf16.msrb.mxu3 %v1872_v8 }
  0xf7   :  { %1299 = vmatpush.bf16.msrb.mxu2 %v1836_v16 }
  0xfa   :  { %1312 = vmatpush.bf16.msrb.mxu3 %v1840_v20 }
  0xfe   :  { %1313 = vmatpush.bf16.msrb.mxu3 %v1808_v30 }
 0x157   :  { %v796_v12 = vpop.f32.mrf.mxu0 }
 0x158   :  { %v797_v18 = vadd.f32 %v2123_v59, %v796_v12  ;;  %v2098_v59 = vld [vmem:[#allocation5 + $0x174] sm:$0xf0]  ;;  %v1880_v12 = vor.u32 %v2086_v10, %v1877_v11  ;;  %v907_v10 = vperm.slane %v905_v3, 0  ;;  %v908_v11 = vperm.slane %v905_v3, 1 }
 0x159   :  { %v1908_v61 = vor.u32 %v2098_v59, %v1907_v58  ;;  %v1744_v58 = vor.u32 %v2053_v50, %v1741_v52  ;;  %v1748_v59 = vor.u32 %v2058_v54, %v1747_v53 }
 0x15a   :  { %v800_v26 = vmax.f32 %v797_v18, 0.0  ;;  %1337 = vmatpush.bf16.msra.mxu0 %v1880_v12  ;;  %v1843_v18 = vld [vmem:[#allocation5 + $0xd8] sm:$0xf] }
 0x15b   :  { %v1844_v21 = vor.u32 %v2082_v19, %v1843_v18 }
 0x15c   :  { %v801_v34 = vpack.c.bf16 %v800_v26, %v800_v26  ;;  %v2073_v26 = vld [vmem:[#allocation5 + $0xac] sm:$0xf0] }
 0x15d   :  { %v1804_v29 = vor.u32 %v2073_v26, %v1803_v24 }
 0x15e   :  { %1720 = vmatmul.msk.bf16.vlgmr.msra.gmra.mxu1 %vm822_vm0, %v801_v34  ;;  %1338 = vmatpush.bf16.msra.mxu0 %v1848_v25  ;;  %v1812_v34 = vor.u32 %v2074_v32, %v1811_v31 }
 0x15f   :  { %v798_v46 = vpop.f32.mrf.mxu0  ;;  %1321 = vmatpush.bf16.msra.mxu1 %v1972_v38  ;;  %v1816_v38 = vor.u32 %v2070_v33, %v1813_v35  ;;  %1300 = vmatpush.bf16.msrb.mxu2 %v1804_v29  ;;  %v914_v29 = vperm.slane %v905_v3, 7 }
 0x160   :  { %v1776_v46 = vor.u32 %v2061_v39, %v1773_v40  ;;  %v911_v40 = vperm.slane %v905_v3, 4 }
 0x162   :  { %1339 = vmatpush.bf16.msra.mxu0 %v1816_v38  ;;  %1314 = vmatpush.bf16.msrb.mxu3 %v1776_v46 }
 0x163   :  { %1322 = vmatpush.bf16.msra.mxu1 %v1940_v51  ;;  %v1784_v51 = vor.u32 %v2062_v44, %v1781_v45  ;;  %1301 = vmatpush.bf16.msrb.mxu2 %v1772_v42 }
 0x166   :  { %1340 = vmatpush.bf16.msra.mxu0 %v1784_v51  ;;  %1315 = vmatpush.bf16.msrb.mxu3 %v1744_v58 }
 0x167   :  { %1323 = vmatpush.bf16.msra.mxu1 %v1908_v61  ;;  %1302 = vmatpush.bf16.msrb.mxu2 %v1740_v57  ;;  %v2124_v61 = vld [vmem:[%s2346_s6] ss:$0 sm:$0xff]  ;;  %s2225_s6 = smov [#allocation7]  }
 0x168   :  { %s1411_s8 = sshll.u32 %s2225_s6, 4  ;;  %s1412_s8 = int_to_ptr.vmem [resolvable:$true] %s1411_s8 }
 0x16a   :  { %1341 = vmatpush.bf16.msra.mxu0 %v1752_v60 }
 0x16b   :  { %1324 = vmatpush.bf16.msra.mxu1 %v1876_v9 }
 0x16f   :  { %1325 = vmatpush.bf16.msra.mxu1 %v1844_v21 }
 0x173   :  { %1326 = vmatpush.bf16.msra.mxu1 %v1812_v34 }
 0x177   :  { %1327 = vmatpush.bf16.msra.mxu1 %v1780_v47 }
 0x17b   :  { %1328 = vmatpush.bf16.msra.mxu1 %v1748_v59 }
 0x1db   :  { %v835_v62 = vpop.f32.mrf.mxu1 }
 0x1dc   :  { %v836_v63 = vadd.f32 %v2124_v61, %v835_v62 }
 0x1de   :  { %v839_v0 = vmax.f32 %v836_v63, 0.0 }
 0x1e0   :  { %v840_v1 = vpack.c.bf16 %v839_v0, %v839_v0 }
 0x1e2   :  { %1251 = vmatmul.bf16.vlgmr.msra.gmra.mxu2 %v840_v1  ;;  %1264 = vmatmul.bf16.vlgmr.msra.gmra.mxu3 %v840_v1 }
 0x1e3   :  { %1277 = vmatmul.bf16.vlgmr.msrb.gmra.mxu1 %v840_v1  ;;  %1290 = vmatmul.bf16.vlgmr.msrb.gmra.mxu0 %v840_v1  ;;  %v837_v2 = vpop.f32.mrf.mxu1 }
 0x1f2   :  { %1303 = vmatmul.bf16.vlgmr.msrb.gmra.mxu2 %v840_v1  ;;  %1316 = vmatmul.bf16.vlgmr.msrb.gmra.mxu3 %v840_v1 }
 0x1f3   :  { %1329 = vmatmul.bf16.vlgmr.msra.gmra.mxu1 %v840_v1  ;;  %1342 = vmatmul.bf16.vlgmr.msra.gmra.mxu0 %v840_v1 }
 0x260   :  { %v1278_v6 = vpop.f32.mrf.mxu1  ;;  %v1291_v7 = vpop.f32.mrf.mxu0 }
 0x261   :  { %v1279_v8 = vadd.f32 %v1278_v6, %v909_v4  ;;  %v1292_v9 = vadd.f32 %v1291_v7, %v910_v5 }
 0x263   :  { %v1349_v12 = vmul.f32 0.5, %v1279_v8  ;;  %v1350_v13 = vmul.f32 0.5, %v1292_v9 }
 0x265   :  { %2125 = vtanh.f32 %v1349_v12  ;;  %v1252_v14 = vpop.f32.mrf.mxu2  ;;  %v1265_v15 = vpop.f32.mrf.mxu3 }
 0x266   :  { %2127 = vtanh.f32 %v1350_v13  ;;  %v1253_v16 = vadd.f32 %v1252_v14, %v907_v10  ;;  %v1266_v17 = vadd.f32 %v1265_v15, %v908_v11 }
 0x268   :  { %v1347_v18 = vmul.f32 0.5, %v1253_v16  ;;  %v1348_v19 = vmul.f32 0.5, %v1266_v17  ;;  %v1280_v20 = vpop.f32.mrf.mxu1  ;;  %v1293_v21 = vpop.f32.mrf.mxu0 }
 0x26a   :  { %2129 = vtanh.f32 %v1347_v18 }
 0x26b   :  { %v2126_v22 = vpop.eup %2125  ;;  %2131 = vtanh.f32 %v1348_v19 }
 0x26c   :  { %v2128_v23 = vpop.eup %2127  ;;  %v1365_v24 = vadd.f32 1.0, %v2126_v22 }
 0x26d   :  { %v1366_v25 = vadd.f32 1.0, %v2128_v23  ;;  %v1254_v26 = vpop.f32.mrf.mxu2  ;;  %v1267_v27 = vpop.f32.mrf.mxu3 }
 0x26e   :  { %v1373_v31 = vmul.f32 0.5, %v1365_v24 }
 0x26f   :  { %v1374_v32 = vmul.f32 0.5, %v1366_v25 }
 0x270   :  { %v2130_v30 = vpop.eup %2129  ;;  %v1330_v33 = vpop.f32.mrf.mxu1  ;;  %v1388_v44 = vrot.slane %v1373_v31, 4 }
 0x271   :  { %v1343_v34 = vpop.f32.mrf.mxu0  ;;  %v2132_v35 = vpop.eup %2131  ;;  %v1363_v36 = vadd.f32 1.0, %v2130_v30  ;;  %v1331_v37 = vadd.f32 %v1330_v33, %v913_v28  ;;  %v1389_v45 = vrot.slane %v1374_v32, 2 }
 0x272   :  { %v1344_v38 = vadd.f32 %v1343_v34, %v914_v29  ;;  %v1364_v39 = vadd.f32 1.0, %v2132_v35 }
 0x273   :  { %v1353_v42 = vmul.f32 0.5, %v1331_v37  ;;  %v1371_v47 = vmul.f32 0.5, %v1363_v36  ;;  %v1396_v53 = vsel %vm1395_vm1, %v1388_v44, %v1389_v45 }
 0x274   :  { %v1354_v43 = vmul.f32 0.5, %v1344_v38  ;;  %v1372_v46 = vmul.f32 0.5, %v1364_v39 }
 0x275   :  { %2133 = vtanh.f32 %v1353_v42  ;;  %v1304_v48 = vpop.f32.mrf.mxu2  ;;  %v1317_v49 = vpop.f32.mrf.mxu3 }
 0x276   :  { %v1387_v50 = vrot.slane %v1372_v46, 6  ;;  %2135 = vtanh.f32 %v1354_v43  ;;  %v1305_v51 = vadd.f32 %v1304_v48, %v911_v40  ;;  %v1318_v52 = vadd.f32 %v1317_v49, %v912_v41 }
 0x278   :  { %v1394_v54 = vsel %vm1393_vm2, %v1371_v47, %v1387_v50  ;;  %v1351_v55 = vmul.f32 0.5, %v1305_v51  ;;  %v1352_v56 = vmul.f32 0.5, %v1318_v52  ;;  %v1332_v57 = vpop.f32.mrf.mxu1 }
 0x279   :  { %v1345_v58 = vpop.f32.mrf.mxu0  ;;  %v1398_v59 = vsel %vm1397_vm3, %v1394_v54, %v1396_v53 }
 0x27a   :  { %2137 = vtanh.f32 %v1351_v55  ;;  %1404 = vst [vmem:[#allocation7] sm:$0xff] %v1398_v59 }
 0x27b   :  { %v2134_v60 = vpop.eup %2133  ;;  %2139 = vtanh.f32 %v1352_v56 }
 0x27c   :  { %v2136_v61 = vpop.eup %2135  ;;  %v1369_v62 = vadd.f32 1.0, %v2134_v60 }
 0x27d   :  { %v1370_v63 = vadd.f32 1.0, %v2136_v61  ;;  %v1306_v0 = vpop.f32.mrf.mxu2  ;;  %v1319_v1 = vpop.f32.mrf.mxu3 }
 0x27e   :  { %v1377_v3 = vmul.f32 0.5, %v1369_v62 }
 0x27f   :  { %v1378_v4 = vmul.f32 0.5, %v1370_v63 }
 0x280   :  { %v2138_v2 = vpop.eup %2137  ;;  %v1391_v8 = vrot.slane %v1377_v3, 4 }
 0x281   :  { %v2140_v5 = vpop.eup %2139  ;;  %v1367_v6 = vadd.f32 1.0, %v2138_v2  ;;  %v1392_v9 = vrot.slane %v1378_v4, 2 }
 0x282   :  { %v1368_v7 = vadd.f32 1.0, %v2140_v5 }
 0x283   :  { %v1375_v11 = vmul.f32 0.5, %v1367_v6  ;;  %v1400_v13 = vsel %vm1395_vm1, %v1391_v8, %v1392_v9 }
 0x284   :  { %v1376_v10 = vmul.f32 0.5, %v1368_v7 }
 0x286   :  { %v1390_v12 = vrot.slane %v1376_v10, 6 }
 0x288   :  { %v1399_v14 = vsel %vm1393_vm2, %v1375_v11, %v1390_v12 }
 0x289   :  { %v1401_v15 = vsel %vm1397_vm3, %v1399_v14, %v1400_v13 }
 0x28a   :  { %1405 = vst [vmem:[#allocation7 + $0x8] sm:$0xff] %v1401_v15 }
 0x28b   :  { %1416 = dma.vmem_to_hbm [thread:$0]  %s1412_s8, 256, %s1414_s26, [#allocation4]  }
 0x28c   :  { %2217 = dma.done.wait [#allocation4], 256  }
 0x28d   :  { %2218 = vsyncadd [#allocation4], 4294967040 }
 0x28e   :  { %1421 = vsyncpa [#allocation3], 1 }
 0x28f   :  { %1422 = vsyncpa [#allocation6], 1 }
 0x290   :  { %1423 = vsyncpa [#allocation4], 1 }

// kernel: tpu_custom_call.1
= control target key start
LH: loop header
LB: loop body
LE: loop exit
PB: predicated region body
PF: predicated region fallthrough
CT: control target
= control target key end

     0   :  { %14 = vsyncpa [#allocation3], 0  ;;  %s2340_s0 = inlined_call_operand.vmem [shape: f32[2,1024], index: 0, kind: input, shape index: {}]   ;;  %s2341_s1 = inlined_call_operand.hbm [shape: bf16[1024,128], index: 1, kind: input, shape index: {}]   ;;  %s2342_s2 = inlined_call_operand.vmem [shape: f32[1,128], index: 2, kind: input, shape index: {}]   ;;  %s2343_s3 = inlined_call_operand.vmem [shape: bf16[128,32], index: 3, kind: input, shape index: {}]   ;;  %s2344_s4 = inlined_call_operand.vmem [shape: f32[1,32], index: 4, kind: input, shape index: {}]   ;;  %s2345_s5 = inlined_call_operand.vmem [shape: bf16[32,128], index: 5, kind: input, shape index: {}]   ;;  %s2346_s6 = inlined_call_operand.vmem [shape: f32[1,128], index: 6, kind: input, shape index: {}]   ;;  %s2347_s7 = inlined_call_operand.hbm [shape: bf16[128,1024], index: 7, kind: input, shape index: {}]   ;;  %s2348_s8 = inlined_call_operand.vmem [shape: f32[1,1024], index: 8, kind: input, shape index: {}]   ;;  %s2349_s9 = inlined_call_operand.hbm [shape: f32[2,1024], index: 9, kind: output, shape index: {}]  }
   0x1   :  { %15 = vsyncpa [#allocation6], 0 }
   0x2   :  { %16 = vsyncpa [#allocation4], 0  ;;  %s23_s11 = sshll.u32 %s2341_s1, 4  ;;  %s2219_s12 = smov [#allocation2]   ;;  %s24_s11 = int_to_ptr.hbm [resolvable:$true] %s23_s11 }
   0x3   :  { %s25_s13 = sshll.u32 %s2219_s12, 4  ;;  %s46_s16 = sshll.u32 %s2347_s7, 4  ;;  %s26_s13 = int_to_ptr.vmem [resolvable:$true] %s25_s13  ;;  %s47_s16 = int_to_ptr.hbm [resolvable:$true] %s46_s16 }
   0x4   :  { %s2220_s17 = smov 64   ;;  %s2221_s18 = smov 4  }
   0x5   :  { %31 = dma.hbm_to_vmem [thread:$0]  %s24_s11, 8192, %s26_s13, [#allocation3], %s2220_s17, %s2220_s17, %s2221_s18  }
   0x6   :  { %s2222_s19 = smov [#allocation5]   ;;  %s2223_s21 = smov 512  }
   0x7   :  { %s48_s20 = sshll.u32 %s2222_s19, 4  ;;  %s2224_s22 = smov 32   ;;  %s49_s20 = int_to_ptr.vmem [resolvable:$true] %s48_s20 }
   0x8   :  { %54 = dma.hbm_to_vmem [thread:$0]  %s47_s16, 8192, %s49_s20, [#allocation6], %s2223_s21, %s2223_s21, %s2224_s22  }
   0x9   :  { %2213 = dma.done.wait [#allocation3], 8192  }
   0xa   :  { %2214 = vsyncadd [#allocation3], 4294959104 }
   0xb   :  { %2215 = dma.done.wait [#allocation6], 8192  }
   0xc   :  { %2216 = vsyncadd [#allocation6], 4294959104  ;;  %v1984_v0 = vld [vmem:[#allocation2 + $0x38] sm:$0xff]  ;;  %v1983_v4 = vld [vmem:[#allocation2 + $0x30] sm:$0xff]  ;;  %vm822_vm0 = vcmask 261120   ;;  %vm1395_vm1 = vcmask 1045508  }
   0xd   :  { %v1992_v1 = vld [vmem:[#allocation2 + $0x78] sm:$0xff]  ;;  %613 = vmatpush.bf16.msra.mxu0 %v1984_v0  ;;  %v1991_v5 = vld [vmem:[#allocation2 + $0x70] sm:$0xff]  ;;  %v1982_v8 = vld [vmem:[#allocation2 + $0x28] sm:$0xff]  ;;  %vm1393_vm2 = vcmask 1041408   ;;  %vm1397_vm3 = vcmask 1043456   ;;  %s1413_s26 = sshll.u32 %s2349_s9, 4  ;;  %s1414_s26 = int_to_ptr.hbm [resolvable:$true] %s1413_s26 }
   0xe   :  { %v2000_v2 = vld [vmem:[#allocation2 + $0xb8] sm:$0xff]  ;;  %626 = vmatpush.bf16.msra.mxu1 %v1992_v1  ;;  %v1999_v6 = vld [vmem:[#allocation2 + $0xb0] sm:$0xff]  ;;  %v1990_v9 = vld [vmem:[#allocation2 + $0x68] sm:$0xff] }
   0xf   :  { %v2008_v3 = vld [vmem:[#allocation2 + $0xf8] sm:$0xff]  ;;  %639 = vmatpush.bf16.msra.mxu2 %v2000_v2  ;;  %v2007_v7 = vld [vmem:[#allocation2 + $0xf0] sm:$0xff]  ;;  %v1998_v10 = vld [vmem:[#allocation2 + $0xa8] sm:$0xff] }
  0x10   :  { %652 = vmatpush.bf16.msra.mxu3 %v2008_v3  ;;  %v2006_v11 = vld [vmem:[#allocation2 + $0xe8] sm:$0xff]  ;;  %v1981_v12 = vld [vmem:[#allocation2 + $0x20] sm:$0xff]  ;;  %v66_v16 = vld [vmem:[%s2340_s0] sm:$0xff] }
  0x11   :  { %614 = vmatpush.bf16.msra.mxu0 %v1983_v4  ;;  %v1989_v13 = vld [vmem:[#allocation2 + $0x60] sm:$0xff]  ;;  %v1980_v17 = vld [vmem:[#allocation2 + $0x18] sm:$0xff]  ;;  %70 = vst [vmem:[#allocation1] ss:$4 sm:$0xff] %v66_v16  ;;  %v1979_v21 = vld [vmem:[#allocation2 + $0x10] sm:$0xff] }
  0x12   :  { %627 = vmatpush.bf16.msra.mxu1 %v1991_v5  ;;  %v1997_v14 = vld [vmem:[#allocation2 + $0xa0] sm:$0xff]  ;;  %v1988_v18 = vld [vmem:[#allocation2 + $0x58] sm:$0xff]  ;;  %v1987_v22 = vld [vmem:[#allocation2 + $0x50] sm:$0xff] }
  0x13   :  { %640 = vmatpush.bf16.msra.mxu2 %v1999_v6  ;;  %v2005_v15 = vld [vmem:[#allocation2 + $0xe0] sm:$0xff]  ;;  %v1996_v19 = vld [vmem:[#allocation2 + $0x98] sm:$0xff]  ;;  %v1995_v23 = vld [vmem:[#allocation2 + $0x90] sm:$0xff] }
  0x14   :  { %653 = vmatpush.bf16.msra.mxu3 %v2007_v7  ;;  %v2004_v20 = vld [vmem:[#allocation2 + $0xd8] sm:$0xff]  ;;  %v2003_v24 = vld [vmem:[#allocation2 + $0xd0] sm:$0xff]  ;;  %v1978_v25 = vld [vmem:[#allocation2 + $0x8] sm:$0xff] }
  0x15   :  { %615 = vmatpush.bf16.msra.mxu0 %v1982_v8  ;;  %v1986_v26 = vld [vmem:[#allocation2 + $0x48] sm:$0xff]  ;;  %v67_v29 = vld [vmem:[%s2340_s0 + $0x8] sm:$0xff]  ;;  %v2016_v34 = vld [vmem:[#allocation2 + $0x138] sm:$0xff] }
  0x16   :  { %628 = vmatpush.bf16.msra.mxu1 %v1990_v9  ;;  %v1994_v27 = vld [vmem:[#allocation2 + $0x88] sm:$0xff]  ;;  %v1977_v30 = vld [vmem:[#allocation2] sm:$0xff]  ;;  %72 = vst [vmem:[#allocation1 + $0x20] ss:$4 sm:$0xff] %v67_v29  ;;  %v2024_v35 = vld [vmem:[#allocation2 + $0x178] sm:$0xff] }
  0x17   :  { %641 = vmatpush.bf16.msra.mxu2 %v1998_v10  ;;  %v2002_v28 = vld [vmem:[#allocation2 + $0xc8] sm:$0xff]  ;;  %v1985_v31 = vld [vmem:[#allocation2 + $0x40] sm:$0xff]  ;;  %v2032_v40 = vld [vmem:[#allocation2 + $0x1b8] sm:$0xff] }
  0x18   :  { %654 = vmatpush.bf16.msra.mxu3 %v2006_v11  ;;  %v1993_v32 = vld [vmem:[#allocation2 + $0x80] sm:$0xff]  ;;  %v75_v36 = vld.sshfl [vmem:[#allocation1 + $0x10] sm:$0xff pattern:$0x73625140]  ;;  %v2040_v41 = vld [vmem:[#allocation2 + $0x1f8] sm:$0xff] }
  0x19   :  { %616 = vmatpush.bf16.msra.mxu0 %v1981_v12  ;;  %v2001_v33 = vld [vmem:[#allocation2 + $0xc0] sm:$0xff]  ;;  %v73_v37 = vld.sshfl [vmem:[#allocation1] sm:$0xff pattern:$0x73625140]  ;;  %v91_v42 = vpack.c.bf16 %v75_v36, %v75_v36  ;;  %v2015_v46 = vld [vmem:[#allocation2 + $0x130] sm:$0xff] }
  0x1a   :  { %629 = vmatpush.bf16.msra.mxu1 %v1989_v13  ;;  %v76_v38 = vld.sshfl [vmem:[#allocation1 + $0x18] sm:$0xff pattern:$0x73625140]  ;;  %v74_v39 = vld.sshfl [vmem:[#allocation1 + $0x8] sm:$0xff pattern:$0x73625140]  ;;  %v89_v43 = vpack.c.bf16 %v73_v37, %v73_v37 }
  0x1b   :  { %642 = vmatpush.bf16.msra.mxu2 %v1997_v14  ;;  %v92_v44 = vpack.c.bf16 %v76_v38, %v76_v38  ;;  %v90_v45 = vpack.c.bf16 %v74_v39, %v74_v39  ;;  %v2023_v47 = vld [vmem:[#allocation2 + $0x170] sm:$0xff]  ;;  %v2014_v50 = vld [vmem:[#allocation2 + $0x128] sm:$0xff]  ;;  %v2013_v54 = vld [vmem:[#allocation2 + $0x120] sm:$0xff] }
  0x1c   :  { %655 = vmatpush.bf16.msra.mxu3 %v2005_v15  ;;  %v2031_v48 = vld [vmem:[#allocation2 + $0x1b0] sm:$0xff]  ;;  %v2022_v51 = vld [vmem:[#allocation2 + $0x168] sm:$0xff]  ;;  %v2021_v55 = vld [vmem:[#allocation2 + $0x160] sm:$0xff] }
  0x1d   :  { %617 = vmatpush.bf16.msra.mxu0 %v1980_v17  ;;  %v2039_v49 = vld [vmem:[#allocation2 + $0x1f0] sm:$0xff]  ;;  %v2030_v52 = vld [vmem:[#allocation2 + $0x1a8] sm:$0xff]  ;;  %v2029_v56 = vld [vmem:[#allocation2 + $0x1a0] sm:$0xff] }
  0x1e   :  { %630 = vmatpush.bf16.msra.mxu1 %v1988_v18  ;;  %v2038_v53 = vld [vmem:[#allocation2 + $0x1e8] sm:$0xff]  ;;  %v2037_v57 = vld [vmem:[#allocation2 + $0x1e0] sm:$0xff]  ;;  %v2012_v58 = vld [vmem:[#allocation2 + $0x118] sm:$0xff] }
  0x1f   :  { %643 = vmatpush.bf16.msra.mxu2 %v1996_v19  ;;  %v2020_v59 = vld [vmem:[#allocation2 + $0x158] sm:$0xff]  ;;  %v2011_v62 = vld [vmem:[#allocation2 + $0x110] sm:$0xff]  ;;  %v2010_v2 = vld [vmem:[#allocation2 + $0x108] sm:$0xff] }
  0x20   :  { %656 = vmatpush.bf16.msra.mxu3 %v2004_v20  ;;  %v2028_v60 = vld [vmem:[#allocation2 + $0x198] sm:$0xff]  ;;  %v2019_v63 = vld [vmem:[#allocation2 + $0x150] sm:$0xff]  ;;  %v2018_v3 = vld [vmem:[#allocation2 + $0x148] sm:$0xff] }
  0x21   :  { %618 = vmatpush.bf16.msra.mxu0 %v1979_v21  ;;  %v2036_v61 = vld [vmem:[#allocation2 + $0x1d8] sm:$0xff]  ;;  %v2027_v0 = vld [vmem:[#allocation2 + $0x190] sm:$0xff]  ;;  %v2026_v4 = vld [vmem:[#allocation2 + $0x188] sm:$0xff] }
  0x22   :  { %631 = vmatpush.bf16.msra.mxu1 %v1987_v22  ;;  %v2035_v1 = vld [vmem:[#allocation2 + $0x1d0] sm:$0xff]  ;;  %v2034_v5 = vld [vmem:[#allocation2 + $0x1c8] sm:$0xff]  ;;  %v2009_v6 = vld [vmem:[#allocation2 + $0x100] sm:$0xff] }
  0x23   :  { %644 = vmatpush.bf16.msra.mxu2 %v1995_v23  ;;  %v2017_v7 = vld [vmem:[#allocation2 + $0x140] sm:$0xff]  ;;  %v77_v10 = vld.sshfl [vmem:[#allocation1 + $0x20] sm:$0xff pattern:$0x73625140]  ;;  %v2048_v18 = vld [vmem:[%s2343_s3 + $0x38] sm:$0xff] }
  0x24   :  { %657 = vmatpush.bf16.msra.mxu3 %v2003_v24  ;;  %v2025_v8 = vld [vmem:[#allocation2 + $0x180] sm:$0xff]  ;;  %v79_v12 = vld.sshfl [vmem:[#allocation1 + $0x30] sm:$0xff pattern:$0x73625140]  ;;  %v93_v14 = vpack.c.bf16 %v77_v10, %v77_v10  ;;  %v2045_v21 = vld [vmem:[%s2343_s3 + $0x20] sm:$0xff] }
  0x25   :  { %619 = vmatpush.bf16.msra.mxu0 %v1978_v25  ;;  %v2033_v9 = vld [vmem:[#allocation2 + $0x1c0] sm:$0xff]  ;;  %v80_v13 = vld.sshfl [vmem:[#allocation1 + $0x38] sm:$0xff pattern:$0x73625140]  ;;  %v95_v16 = vpack.c.bf16 %v79_v12, %v79_v12  ;;  %v2047_v19 = vld [vmem:[%s2343_s3 + $0x30] sm:$0xff] }
  0x26   :  { %632 = vmatpush.bf16.msra.mxu1 %v1986_v26  ;;  %v78_v11 = vld.sshfl [vmem:[#allocation1 + $0x28] sm:$0xff pattern:$0x73625140]  ;;  %v96_v17 = vpack.c.bf16 %v80_v13, %v80_v13  ;;  %v2044_v22 = vld [vmem:[%s2343_s3 + $0x18] sm:$0xff]  ;;  %v2043_v24 = vld [vmem:[%s2343_s3 + $0x10] sm:$0xff] }
  0x27   :  { %645 = vmatpush.bf16.msra.mxu2 %v1994_v27  ;;  %v94_v15 = vpack.c.bf16 %v78_v11, %v78_v11  ;;  %v2046_v20 = vld [vmem:[%s2343_s3 + $0x28] sm:$0xff]  ;;  %v2049_v36 = vld [vmem:[%s2345_s5] sm:$0xff]  ;;  %v2104_v10 = vld [vmem:[#allocation5 + $0x1a4] sm:$0xf0] }
  0x28   :  { %658 = vmatpush.bf16.msra.mxu3 %v2002_v28  ;;  %v2042_v26 = vld [vmem:[%s2343_s3 + $0x8] sm:$0xff]  ;;  %v2100_v11 = vld [vmem:[#allocation5 + $0x18c] sm:$0xf] }
  0x29   :  { %620 = vmatpush.bf16.msra.mxu0 %v1977_v30  ;;  %v2041_v30 = vld [vmem:[%s2343_s3] sm:$0xff]  ;;  %v1925_v13 = vld [vmem:[#allocation5 + $0x1a8] sm:$0xf0] }
  0x2a   :  { %633 = vmatpush.bf16.msra.mxu1 %v1985_v31 }
  0x2b   :  { %646 = vmatpush.bf16.msra.mxu2 %v1993_v32  ;;  %v2122_v32 = vld [vmem:[%s2342_s2] ss:$0 sm:$0xff] }
  0x2c   :  { %659 = vmatpush.bf16.msra.mxu3 %v2001_v33  ;;  %621 = vmatmul.bf16.vlgmr.msra.gmra.mxu0 %v89_v43  ;;  %v2050_v33 = vld [vmem:[%s2345_s5 + $0x8] sm:$0xff] }
  0x2d   :  { %665 = vmatpush.bf16.msrb.mxu0 %v2016_v34  ;;  %634 = vmatmul.bf16.vlgmr.msra.gmra.mxu1 %v90_v45 }
  0x2e   :  { %678 = vmatpush.bf16.msrb.mxu1 %v2024_v35  ;;  %647 = vmatmul.bf16.vlgmr.msra.gmra.mxu2 %v91_v42 }
  0x2f   :  { %691 = vmatpush.bf16.msrb.mxu2 %v2032_v40  ;;  %660 = vmatmul.bf16.vlgmr.msra.gmra.mxu3 %v92_v44 }
  0x30   :  { %704 = vmatpush.bf16.msrb.mxu3 %v2040_v41 }
  0x31   :  { %666 = vmatpush.bf16.msrb.mxu0 %v2015_v46 }
  0x32   :  { %679 = vmatpush.bf16.msrb.mxu1 %v2023_v47 }
  0x33   :  { %692 = vmatpush.bf16.msrb.mxu2 %v2031_v48 }
  0x34   :  { %705 = vmatpush.bf16.msrb.mxu3 %v2039_v49 }
  0x35   :  { %667 = vmatpush.bf16.msrb.mxu0 %v2014_v50 }
  0x36   :  { %680 = vmatpush.bf16.msrb.mxu1 %v2022_v51 }
  0x37   :  { %693 = vmatpush.bf16.msrb.mxu2 %v2030_v52 }
  0x38   :  { %706 = vmatpush.bf16.msrb.mxu3 %v2038_v53 }
  0x39   :  { %668 = vmatpush.bf16.msrb.mxu0 %v2013_v54 }
  0x3a   :  { %681 = vmatpush.bf16.msrb.mxu1 %v2021_v55  ;;  %v1947_v55 = vld [vmem:[#allocation5 + $0x1c0] sm:$0xf] }
  0x3b   :  { %694 = vmatpush.bf16.msrb.mxu2 %v2029_v56  ;;  %v2111_v56 = vld [vmem:[#allocation5 + $0x1dc] sm:$0xf0] }
  0x3c   :  { %707 = vmatpush.bf16.msrb.mxu3 %v2037_v57  ;;  %v2107_v57 = vld [vmem:[#allocation5 + $0x1c4] sm:$0xf] }
  0x3d   :  { %669 = vmatpush.bf16.msrb.mxu0 %v2012_v58  ;;  %v1948_v58 = vor.u32 %v2111_v56, %v1947_v55  ;;  %v1795_v55 = vld [vmem:[#allocation5 + $0x88] sm:$0xf] }
  0x3e   :  { %682 = vmatpush.bf16.msrb.mxu1 %v2020_v59  ;;  %v1949_v59 = vld [vmem:[#allocation5 + $0x1e0] sm:$0xf0]  ;;  %v2072_v56 = vld [vmem:[#allocation5 + $0xa4] sm:$0xf0] }
  0x3f   :  { %695 = vmatpush.bf16.msrb.mxu2 %v2028_v60  ;;  %v1955_v60 = vld [vmem:[#allocation5 + $0x1c8] sm:$0xf] }
  0x40   :  { %708 = vmatpush.bf16.msrb.mxu3 %v2036_v61  ;;  %v2112_v61 = vld [vmem:[#allocation5 + $0x1e4] sm:$0xf0] }
  0x41   :  { %670 = vmatpush.bf16.msrb.mxu0 %v2011_v62  ;;  %v1952_v62 = vor.u32 %v2107_v57, %v1949_v59  ;;  %v2068_v57 = vld [vmem:[#allocation5 + $0x8c] sm:$0xf]  ;;  %v2123_v59 = vld [vmem:[%s2344_s4] ss:$0 sm:$0xff] }
  0x42   :  { %683 = vmatpush.bf16.msrb.mxu1 %v2019_v63  ;;  %v1956_v63 = vor.u32 %v2112_v61, %v1955_v60 }
  0x43   :  { %696 = vmatpush.bf16.msrb.mxu2 %v2027_v0  ;;  %v2108_v0 = vld [vmem:[#allocation5 + $0x1cc] sm:$0xf] }
  0x44   :  { %709 = vmatpush.bf16.msrb.mxu3 %v2035_v1  ;;  %v1957_v1 = vld [vmem:[#allocation5 + $0x1e8] sm:$0xf0] }
  0x45   :  { %671 = vmatpush.bf16.msrb.mxu0 %v2010_v2  ;;  %v1915_v2 = vld [vmem:[#allocation5 + $0x180] sm:$0xf] }
  0x46   :  { %684 = vmatpush.bf16.msrb.mxu1 %v2018_v3  ;;  %v1960_v3 = vor.u32 %v2108_v0, %v1957_v1  ;;  %v2063_v0 = vld [vmem:[#allocation5 + $0x5c] sm:$0xf0]  ;;  %v2059_v1 = vld [vmem:[#allocation5 + $0x44] sm:$0xf] }
  0x47   :  { %697 = vmatpush.bf16.msrb.mxu2 %v2026_v4  ;;  %v2103_v4 = vld [vmem:[#allocation5 + $0x19c] sm:$0xf0] }
  0x48   :  { %710 = vmatpush.bf16.msrb.mxu3 %v2034_v5  ;;  %v2099_v5 = vld [vmem:[#allocation5 + $0x184] sm:$0xf] }
  0x49   :  { %672 = vmatpush.bf16.msrb.mxu0 %v2009_v6  ;;  %v1917_v6 = vld [vmem:[#allocation5 + $0x1a0] sm:$0xf0] }
  0x4a   :  { %685 = vmatpush.bf16.msrb.mxu1 %v2017_v7  ;;  %v1916_v7 = vor.u32 %v2103_v4, %v1915_v2  ;;  %v1763_v4 = vld [vmem:[#allocation5 + $0x48] sm:$0xf] }
  0x4b   :  { %698 = vmatpush.bf16.msrb.mxu2 %v2025_v8  ;;  %v1920_v8 = vor.u32 %v2099_v5, %v1917_v6  ;;  %v2064_v5 = vld [vmem:[#allocation5 + $0x64] sm:$0xf0]  ;;  %v2060_v6 = vld [vmem:[#allocation5 + $0x4c] sm:$0xf] }
  0x4c   :  { %711 = vmatpush.bf16.msrb.mxu3 %v2033_v9  ;;  %673 = vmatmul.bf16.vlgmr.msrb.gmra.mxu0 %v93_v14  ;;  %v1923_v9 = vld [vmem:[#allocation5 + $0x188] sm:$0xf]  ;;  %v1883_v14 = vld [vmem:[#allocation5 + $0x140] sm:$0xf] }
  0x4d   :  { %686 = vmatmul.bf16.vlgmr.msrb.gmra.mxu1 %v94_v15  ;;  %787 = vmatpush.bf16.msra.mxu0 %v2048_v18  ;;  %v1924_v12 = vor.u32 %v2104_v10, %v1923_v9  ;;  %v2095_v15 = vld [vmem:[#allocation5 + $0x15c] sm:$0xf0]  ;;  %v1885_v18 = vld [vmem:[#allocation5 + $0x160] sm:$0xf0] }
  0x4e   :  { %699 = vmatmul.bf16.vlgmr.msrb.gmra.mxu2 %v95_v16  ;;  %832 = vmatpush.bf16.msra.mxu1 %v2050_v33  ;;  %v1928_v16 = vor.u32 %v2100_v11, %v1925_v13  ;;  %v2084_v33 = vld [vmem:[#allocation5 + $0x10c] sm:$0xf]  ;;  %v1723_v9 = vld [vmem:[#allocation5] sm:$0xf]  ;;  %v2051_v11 = vld [vmem:[#allocation5 + $0x4] sm:$0xf] }
  0x4f   :  { %712 = vmatmul.bf16.vlgmr.msrb.gmra.mxu3 %v96_v17  ;;  %1243 = vmatpush.bf16.msra.mxu2 %v1948_v58  ;;  %v2091_v17 = vld [vmem:[#allocation5 + $0x144] sm:$0xf]  ;;  %v1797_v58 = vld [vmem:[#allocation5 + $0xa8] sm:$0xf0]  ;;  %v2055_v10 = vld [vmem:[#allocation5 + $0x1c] sm:$0xf0] }
  0x50   :  { %1256 = vmatpush.bf16.msra.mxu3 %v1952_v62  ;;  %v1796_v62 = vor.u32 %v2072_v56, %v1795_v55  ;;  %v1800_v2 = vor.u32 %v2068_v57, %v1797_v58  ;;  %v2093_v55 = vld [vmem:[#allocation5 + $0x154] sm:$0xf]  ;;  %v1907_v58 = vld [vmem:[#allocation5 + $0x158] sm:$0xf] }
  0x51   :  { %788 = vmatpush.bf16.msra.mxu0 %v2047_v19  ;;  %v1891_v19 = vld [vmem:[#allocation5 + $0x148] sm:$0xf]  ;;  %v1901_v57 = vld [vmem:[#allocation5 + $0x170] sm:$0xf0] }
  0x52   :  { %833 = vmatpush.bf16.msra.mxu1 %v2049_v36 }
  0x53   :  { %1244 = vmatpush.bf16.msra.mxu2 %v1916_v7  ;;  %v1765_v7 = vld [vmem:[#allocation5 + $0x68] sm:$0xf0] }
  0x54   :  { %1257 = vmatpush.bf16.msra.mxu3 %v1920_v8 }
  0x55   :  { %789 = vmatpush.bf16.msra.mxu0 %v2046_v20  ;;  %v1884_v20 = vor.u32 %v2095_v15, %v1883_v14  ;;  %v1764_v14 = vor.u32 %v2064_v5, %v1763_v4  ;;  %v1725_v15 = vld [vmem:[#allocation5 + $0x20] sm:$0xf0]  ;;  %v1869_v5 = vld [vmem:[#allocation5 + $0x130] sm:$0xf0] }
  0x56   :  { %1269 = vmatpush.bf16.msrb.mxu1 %v1956_v63  ;;  %v1755_v63 = vld [vmem:[#allocation5 + $0x40] sm:$0xf] }
  0x57   :  { %1245 = vmatpush.bf16.msra.mxu2 %v1884_v20  ;;  %v1756_v8 = vor.u32 %v2063_v0, %v1755_v63  ;;  %v2052_v20 = vld [vmem:[#allocation5 + $0xc] sm:$0xf]  ;;  %v1909_v63 = vld [vmem:[#allocation5 + $0x178] sm:$0xf0] }
  0x59   :  { %790 = vmatpush.bf16.msra.mxu0 %v2045_v21  ;;  %v2096_v21 = vld [vmem:[#allocation5 + $0x164] sm:$0xf0] }
  0x5a   :  { %1270 = vmatpush.bf16.msrb.mxu1 %v1924_v12 }
  0x5d   :  { %791 = vmatpush.bf16.msra.mxu0 %v2044_v22  ;;  %v2092_v22 = vld [vmem:[#allocation5 + $0x14c] sm:$0xf] }
  0x61   :  { %792 = vmatpush.bf16.msra.mxu0 %v2043_v24  ;;  %v1888_v24 = vor.u32 %v2091_v17, %v1885_v18  ;;  %v2056_v17 = vld [vmem:[#allocation5 + $0x24] sm:$0xf0] }
  0x63   :  { %1258 = vmatpush.bf16.msra.mxu3 %v1888_v24  ;;  %v2109_v24 = vld [vmem:[#allocation5 + $0x1d4] sm:$0xf] }
  0x65   :  { %793 = vmatpush.bf16.msra.mxu0 %v2042_v26  ;;  %v1851_v26 = vld [vmem:[#allocation5 + $0x100] sm:$0xf] }
  0x69   :  { %794 = vmatpush.bf16.msra.mxu0 %v2041_v30  ;;  %v1853_v30 = vld [vmem:[#allocation5 + $0x120] sm:$0xf0] }
  0x6d   :  { %1282 = vmatpush.bf16.msrb.mxu0 %v1960_v3  ;;  %v1757_v3 = vld [vmem:[#allocation5 + $0x60] sm:$0xf0] }
  0x6e   :  { %v1760_v13 = vor.u32 %v2059_v1, %v1757_v3  ;;  %v1867_v1 = vld [vmem:[#allocation5 + $0x110] sm:$0xf]  ;;  %v2085_v3 = vld [vmem:[#allocation5 + $0x114] sm:$0xf] }
  0x71   :  { %1283 = vmatpush.bf16.msrb.mxu0 %v1928_v16  ;;  %v1731_v16 = vld [vmem:[#allocation5 + $0x8] sm:$0xf] }
  0xa9   :  { %v622_v23 = vpop.f32.mrf.mxu0 }
  0xaa   :  { %v635_v25 = vpop.f32.mrf.mxu1  ;;  %v623_v37 = vadd.f32 %v2122_v32, %v622_v23  ;;  %v1893_v23 = vld [vmem:[#allocation5 + $0x168] sm:$0xf0]  ;;  %v2088_v32 = vld [vmem:[#allocation5 + $0x124] sm:$0xf0] }
  0xac   :  { %v636_v38 = vadd.f32 %v635_v25, %v623_v37  ;;  %v1892_v25 = vor.u32 %v2096_v21, %v1891_v19  ;;  %v1768_v19 = vor.u32 %v2060_v6, %v1765_v7  ;;  %v1733_v21 = vld [vmem:[#allocation5 + $0x28] sm:$0xf0]  ;;  %v1875_v6 = vld [vmem:[#allocation5 + $0x118] sm:$0xf] }
  0xad   :  { %v2090_v7 = vld [vmem:[#allocation5 + $0x134] sm:$0xf0] }
  0xae   :  { %1271 = vmatpush.bf16.msrb.mxu1 %v1892_v25  ;;  %v1965_v25 = vld [vmem:[#allocation5 + $0x1f0] sm:$0xf0] }
  0xb1   :  { %v648_v27 = vpop.f32.mrf.mxu2  ;;  %v624_v29 = vpop.f32.mrf.mxu0 }
  0xb2   :  { %v661_v28 = vpop.f32.mrf.mxu3  ;;  %v637_v31 = vpop.f32.mrf.mxu1  ;;  %v649_v39 = vadd.f32 %v648_v27, %v636_v38  ;;  %v2087_v27 = vld [vmem:[#allocation5 + $0x11c] sm:$0xf0]  ;;  %v1896_v29 = vor.u32 %v2092_v22, %v1893_v23  ;;  %v1963_v22 = vld [vmem:[#allocation5 + $0x1d0] sm:$0xf] }
  0xb3   :  { %v1859_v31 = vld [vmem:[#allocation5 + $0x108] sm:$0xf]  ;;  %v1819_v38 = vld [vmem:[#allocation5 + $0xc0] sm:$0xf]  ;;  %v2113_v23 = vld [vmem:[#allocation5 + $0x1ec] sm:$0xf0] }
  0xb4   :  { %v662_v40 = vadd.f32 %v661_v28, %v649_v39  ;;  %v2083_v28 = vld [vmem:[#allocation5 + $0x104] sm:$0xf]  ;;  %v1860_v37 = vor.u32 %v2088_v32, %v1859_v31  ;;  %v2079_v39 = vld [vmem:[#allocation5 + $0xdc] sm:$0xf0]  ;;  %1284 = vmatpush.bf16.msrb.mxu0 %v1896_v29  ;;  %v2114_v29 = vld [vmem:[#allocation5 + $0x1f4] sm:$0xf0]  ;;  %v1732_v31 = vor.u32 %v2056_v17, %v1731_v16 }
  0xb5   :  { %v1856_v36 = vor.u32 %v2083_v28, %v1853_v30  ;;  %v1971_v28 = vld [vmem:[#allocation5 + $0x1d8] sm:$0xf]  ;;  %v1728_v30 = vor.u32 %v2051_v11, %v1725_v15  ;;  %v2110_v32 = vld [vmem:[#allocation5 + $0x1dc] sm:$0xf]  ;;  %v2077_v15 = vld [vmem:[#allocation5 + $0xd4] sm:$0xf] }
  0xb6   :  { %1272 = vmatpush.bf16.msrb.mxu1 %v1860_v37  ;;  %v1968_v37 = vor.u32 %v2109_v24, %v1965_v25  ;;  %v1877_v11 = vld [vmem:[#allocation5 + $0x138] sm:$0xf0]  ;;  %v1837_v17 = vld [vmem:[#allocation5 + $0xf0] sm:$0xf0]  ;;  %v1803_v24 = vld [vmem:[#allocation5 + $0x90] sm:$0xf] }
  0xb7   :  { %1259 = vmatpush.bf16.msra.mxu3 %v1856_v36  ;;  %v1964_v36 = vor.u32 %v2113_v23, %v1963_v22  ;;  %v2078_v22 = vld [vmem:[#allocation5 + $0xdc] sm:$0xf] }
  0xb8   :  { %v1845_v23 = vld [vmem:[#allocation5 + $0xf8] sm:$0xf0] }
  0xb9   :  { %v650_v34 = vpop.f32.mrf.mxu2  ;;  %v1848_v25 = vor.u32 %v2078_v22, %v1845_v23 }
  0xba   :  { %v663_v35 = vpop.f32.mrf.mxu3  ;;  %v1861_v34 = vld [vmem:[#allocation5 + $0x128] sm:$0xf0] }
  0xbb   :  { %v1852_v35 = vor.u32 %v2087_v27, %v1851_v26  ;;  %v1724_v27 = vor.u32 %v2055_v10, %v1723_v9  ;;  %v1876_v9 = vor.u32 %v2090_v7, %v1875_v6  ;;  %v2086_v10 = vld [vmem:[#allocation5 + $0x11c] sm:$0xf] }
  0xbd   :  { %1246 = vmatpush.bf16.msra.mxu2 %v1852_v35  ;;  %v1736_v35 = vor.u32 %v2052_v20, %v1733_v21  ;;  %v1840_v20 = vor.u32 %v2077_v15, %v1837_v17 }
  0xc9   :  { %v674_v41 = vpop.f32.mrf.mxu0 }
  0xca   :  { %v687_v42 = vpop.f32.mrf.mxu1  ;;  %v675_v43 = vadd.f32 %v674_v41, %v662_v40  ;;  %v2075_v40 = vld [vmem:[#allocation5 + $0xc4] sm:$0xf]  ;;  %v1864_v41 = vor.u32 %v2084_v33, %v1861_v34  ;;  %v1973_v33 = vld [vmem:[#allocation5 + $0x1f8] sm:$0xf0] }
  0xcc   :  { %v688_v44 = vadd.f32 %v687_v42, %v675_v43  ;;  %v1821_v42 = vld [vmem:[#allocation5 + $0xe0] sm:$0xf0]  ;;  %v1827_v43 = vld [vmem:[#allocation5 + $0xc8] sm:$0xf]  ;;  %1285 = vmatpush.bf16.msrb.mxu0 %v1864_v41  ;;  %v2101_v41 = vld [vmem:[#allocation5 + $0x194] sm:$0xf] }
  0xd1   :  { %v700_v45 = vpop.f32.mrf.mxu2  ;;  %v676_v48 = vpop.f32.mrf.mxu0 }
  0xd2   :  { %v713_v46 = vpop.f32.mrf.mxu3  ;;  %v701_v47 = vadd.f32 %v700_v45, %v688_v44  ;;  %v689_v49 = vpop.f32.mrf.mxu1  ;;  %v2080_v44 = vld [vmem:[#allocation5 + $0xe4] sm:$0xf0]  ;;  %v2076_v45 = vld [vmem:[#allocation5 + $0xcc] sm:$0xf]  ;;  %v1824_v48 = vor.u32 %v2075_v40, %v1821_v42  ;;  %v2105_v40 = vld [vmem:[#allocation5 + $0x1ac] sm:$0xf0]  ;;  %v1976_v42 = vor.u32 %v2110_v32, %v1973_v33 }
  0xd3   :  { %v1828_v49 = vor.u32 %v2080_v44, %v1827_v43  ;;  %v1933_v43 = vld [vmem:[#allocation5 + $0x1b0] sm:$0xf0]  ;;  %v1939_v44 = vld [vmem:[#allocation5 + $0x198] sm:$0xf]  ;;  %v2070_v33 = vld [vmem:[#allocation5 + $0x9c] sm:$0xf] }
  0xd4   :  { %v714_v50 = vadd.f32 %v713_v46, %v701_v47  ;;  %v1829_v46 = vld [vmem:[#allocation5 + $0xe8] sm:$0xf0]  ;;  %v1820_v47 = vor.u32 %v2079_v39, %v1819_v38  ;;  %1260 = vmatpush.bf16.msra.mxu3 %v1824_v48  ;;  %v1972_v38 = vor.u32 %v2114_v29, %v1971_v28  ;;  %v1931_v39 = vld [vmem:[#allocation5 + $0x190] sm:$0xf]  ;;  %v1941_v48 = vld [vmem:[#allocation5 + $0x1b8] sm:$0xf0] }
  0xd5   :  { %1273 = vmatpush.bf16.msrb.mxu1 %v1828_v49  ;;  %v1932_v49 = vor.u32 %v2105_v40, %v1931_v39  ;;  %v1805_v28 = vld [vmem:[#allocation5 + $0xb0] sm:$0xf0]  ;;  %v2074_v32 = vld [vmem:[#allocation5 + $0xb4] sm:$0xf0] }
  0xd6   :  { %v717_v51 = vmax.f32 %v714_v50, 0.0  ;;  %v1787_v50 = vld [vmem:[#allocation5 + $0x80] sm:$0xf]  ;;  %1247 = vmatpush.bf16.msra.mxu2 %v1820_v47  ;;  %v2102_v47 = vld [vmem:[#allocation5 + $0x19c] sm:$0xf] }
  0xd7   :  { %v2061_v39 = vld [vmem:[#allocation5 + $0x54] sm:$0xf] }
  0xd8   :  { %v718_v52 = vpack.c.bf16 %v717_v51, %v717_v51  ;;  %v2071_v51 = vld [vmem:[#allocation5 + $0x9c] sm:$0xf0]  ;;  %v1773_v40 = vld [vmem:[#allocation5 + $0x70] sm:$0xf0] }
  0xd9   :  { %v702_v53 = vpop.f32.mrf.mxu2  ;;  %v1788_v60 = vor.u32 %v2071_v51, %v1787_v50  ;;  %1274 = vmatpush.bf16.msrb.mxu1 %v1796_v62  ;;  %v1936_v50 = vor.u32 %v2101_v41, %v1933_v43  ;;  %v2094_v62 = vld [vmem:[#allocation5 + $0x15c] sm:$0xf]  ;;  %v1779_v41 = vld [vmem:[#allocation5 + $0x58] sm:$0xf] }
  0xda   :  { %v715_v54 = vpop.f32.mrf.mxu3  ;;  %795 = vmatmul.bf16.vlgmr.msra.gmra.mxu0 %v718_v52  ;;  %v2067_v52 = vld [vmem:[#allocation5 + $0x84] sm:$0xf]  ;;  %v1832_v53 = vor.u32 %v2076_v45, %v1829_v46  ;;  %v2106_v45 = vld [vmem:[#allocation5 + $0x1b4] sm:$0xf0]  ;;  %v1912_v0 = vor.u32 %v2094_v62, %v1909_v63 }
  0xdb   :  { %v1789_v54 = vld [vmem:[#allocation5 + $0xa0] sm:$0xf0]  ;;  %1248 = vmatpush.bf16.msra.mxu2 %v1788_v60  ;;  %v1940_v51 = vor.u32 %v2106_v45, %v1939_v44  ;;  %v1904_v60 = vor.u32 %v2093_v55, %v1901_v57  ;;  %v2066_v43 = vld [vmem:[#allocation5 + $0x74] sm:$0xf0]  ;;  %v2062_v44 = vld [vmem:[#allocation5 + $0x5c] sm:$0xf] }
  0xdc   :  { %v1792_v61 = vor.u32 %v2067_v52, %v1789_v54  ;;  %1286 = vmatpush.bf16.msrb.mxu0 %v1832_v53  ;;  %v1944_v52 = vor.u32 %v2102_v47, %v1941_v48  ;;  %v1899_v53 = vld [vmem:[#allocation5 + $0x150] sm:$0xf]  ;;  %v1781_v45 = vld [vmem:[#allocation5 + $0x78] sm:$0xf0]  ;;  %v1780_v47 = vor.u32 %v2066_v43, %v1779_v41 }
  0xdd   :  { %1275 = vmatpush.bf16.msrb.mxu1 %v1764_v14  ;;  %v2097_v54 = vld [vmem:[#allocation5 + $0x16c] sm:$0xf0]  ;;  %v2054_v55 = vld [vmem:[#allocation5 + $0x1c] sm:$0xf] }
  0xde   :  { %1261 = vmatpush.bf16.msra.mxu3 %v1792_v61  ;;  %v1900_v56 = vor.u32 %v2097_v54, %v1899_v53  ;;  %v2081_v14 = vld [vmem:[#allocation5 + $0xec] sm:$0xf0]  ;;  %v1747_v53 = vld [vmem:[#allocation5 + $0x18] sm:$0xf] }
  0xdf   :  { %1249 = vmatpush.bf16.msra.mxu2 %v1756_v8  ;;  %v1872_v8 = vor.u32 %v2085_v3, %v1869_v5  ;;  %v1739_v48 = vld [vmem:[#allocation5 + $0x10] sm:$0xf]  ;;  %v2058_v54 = vld [vmem:[#allocation5 + $0x34] sm:$0xf0] }
  0xe0   :  { %1287 = vmatpush.bf16.msrb.mxu0 %v1800_v2  ;;  %v2089_v2 = vld [vmem:[#allocation5 + $0x12c] sm:$0xf0]  ;;  %v905_v3 = vld [vmem:[%s2348_s8] sm:$0xff] }
  0xe1   :  { %1276 = vmatpush.bf16.msrb.mxu1 %v1732_v31  ;;  %v1868_v4 = vor.u32 %v2089_v2, %v1867_v1  ;;  %v1811_v31 = vld [vmem:[#allocation5 + $0x98] sm:$0xf]  ;;  %v910_v5 = vperm.slane %v905_v3, 3  ;;  %v912_v41 = vperm.slane %v905_v3, 5 }
  0xe2   :  { %1262 = vmatpush.bf16.msra.mxu3 %v1760_v13  ;;  %v1835_v13 = vld [vmem:[#allocation5 + $0xd0] sm:$0xf] }
  0xe3   :  { %1250 = vmatpush.bf16.msra.mxu2 %v1724_v27  ;;  %v1836_v16 = vor.u32 %v2081_v14, %v1835_v13  ;;  %v2069_v27 = vld [vmem:[#allocation5 + $0x94] sm:$0xf] }
  0xe4   :  { %1288 = vmatpush.bf16.msrb.mxu0 %v1768_v19  ;;  %v2082_v19 = vld [vmem:[#allocation5 + $0xf4] sm:$0xf0] }
  0xe6   :  { %1263 = vmatpush.bf16.msra.mxu3 %v1728_v30  ;;  %v1808_v30 = vor.u32 %v2069_v27, %v1805_v28  ;;  %v913_v28 = vperm.slane %v905_v3, 6 }
  0xe7   :  { %1295 = vmatpush.bf16.msrb.mxu2 %v1964_v36  ;;  %v1771_v36 = vld [vmem:[#allocation5 + $0x50] sm:$0xf] }
  0xe8   :  { %1289 = vmatpush.bf16.msrb.mxu0 %v1736_v35  ;;  %v1813_v35 = vld [vmem:[#allocation5 + $0xb8] sm:$0xf0] }
  0xea   :  { %1308 = vmatpush.bf16.msrb.mxu3 %v1968_v37  ;;  %v2065_v37 = vld [vmem:[#allocation5 + $0x6c] sm:$0xf0] }
  0xeb   :  { %1296 = vmatpush.bf16.msrb.mxu2 %v1932_v49  ;;  %v2057_v49 = vld [vmem:[#allocation5 + $0x2c] sm:$0xf0] }
  0xec   :  { %1334 = vmatpush.bf16.msra.mxu0 %v1976_v42  ;;  %v1772_v42 = vor.u32 %v2065_v37, %v1771_v36  ;;  %v1740_v57 = vor.u32 %v2057_v49, %v1739_v48 }
  0xee   :  { %1309 = vmatpush.bf16.msrb.mxu3 %v1936_v50  ;;  %v2053_v50 = vld [vmem:[#allocation5 + $0x14] sm:$0xf] }
  0xef   :  { %1297 = vmatpush.bf16.msrb.mxu2 %v1900_v56  ;;  %v1749_v56 = vld [vmem:[#allocation5 + $0x38] sm:$0xf0] }
  0xf0   :  { %1335 = vmatpush.bf16.msra.mxu0 %v1944_v52  ;;  %v1741_v52 = vld [vmem:[#allocation5 + $0x30] sm:$0xf0] }
  0xf2   :  { %1310 = vmatpush.bf16.msrb.mxu3 %v1904_v60  ;;  %v1752_v60 = vor.u32 %v2054_v55, %v1749_v56 }
  0xf3   :  { %1298 = vmatpush.bf16.msrb.mxu2 %v1868_v4  ;;  %v909_v4 = vperm.slane %v905_v3, 2 }
  0xf4   :  { %1336 = vmatpush.bf16.msra.mxu0 %v1912_v0 }
  0xf6   :  { %1311 = vmatpush.bf16.msrb.mxu3 %v1872_v8 }
  0xf7   :  { %1299 = vmatpush.bf16.msrb.mxu2 %v1836_v16 }
  0xfa   :  { %1312 = vmatpush.bf16.msrb.mxu3 %v1840_v20 }
  0xfe   :  { %1313 = vmatpush.bf16.msrb.mxu3 %v1808_v30 }
 0x157   :  { %v796_v12 = vpop.f32.mrf.mxu0 }
 0x158   :  { %v797_v18 = vadd.f32 %v2123_v59, %v796_v12  ;;  %v2098_v59 = vld [vmem:[#allocation5 + $0x174] sm:$0xf0]  ;;  %v1880_v12 = vor.u32 %v2086_v10, %v1877_v11  ;;  %v907_v10 = vperm.slane %v905_v3, 0  ;;  %v908_v11 = vperm.slane %v905_v3, 1 }
 0x159   :  { %v1908_v61 = vor.u32 %v2098_v59, %v1907_v58  ;;  %v1744_v58 = vor.u32 %v2053_v50, %v1741_v52  ;;  %v1748_v59 = vor.u32 %v2058_v54, %v1747_v53 }
 0x15a   :  { %v800_v26 = vmax.f32 %v797_v18, 0.0  ;;  %1337 = vmatpush.bf16.msra.mxu0 %v1880_v12  ;;  %v1843_v18 = vld [vmem:[#allocation5 + $0xd8] sm:$0xf] }
 0x15b   :  { %v1844_v21 = vor.u32 %v2082_v19, %v1843_v18 }
 0x15c   :  { %v801_v34 = vpack.c.bf16 %v800_v26, %v800_v26  ;;  %v2073_v26 = vld [vmem:[#allocation5 + $0xac] sm:$0xf0] }
 0x15d   :  { %v1804_v29 = vor.u32 %v2073_v26, %v1803_v24 }
 0x15e   :  { %1720 = vmatmul.msk.bf16.vlgmr.msra.gmra.mxu1 %vm822_vm0, %v801_v34  ;;  %1338 = vmatpush.bf16.msra.mxu0 %v1848_v25  ;;  %v1812_v34 = vor.u32 %v2074_v32, %v1811_v31 }
 0x15f   :  { %v798_v46 = vpop.f32.mrf.mxu0  ;;  %1321 = vmatpush.bf16.msra.mxu1 %v1972_v38  ;;  %v1816_v38 = vor.u32 %v2070_v33, %v1813_v35  ;;  %1300 = vmatpush.bf16.msrb.mxu2 %v1804_v29  ;;  %v914_v29 = vperm.slane %v905_v3, 7 }
 0x160   :  { %v1776_v46 = vor.u32 %v2061_v39, %v1773_v40  ;;  %v911_v40 = vperm.slane %v905_v3, 4 }
 0x162   :  { %1339 = vmatpush.bf16.msra.mxu0 %v1816_v38  ;;  %1314 = vmatpush.bf16.msrb.mxu3 %v1776_v46 }
 0x163   :  { %1322 = vmatpush.bf16.msra.mxu1 %v1940_v51  ;;  %v1784_v51 = vor.u32 %v2062_v44, %v1781_v45  ;;  %1301 = vmatpush.bf16.msrb.mxu2 %v1772_v42 }
 0x166   :  { %1340 = vmatpush.bf16.msra.mxu0 %v1784_v51  ;;  %1315 = vmatpush.bf16.msrb.mxu3 %v1744_v58 }
 0x167   :  { %1323 = vmatpush.bf16.msra.mxu1 %v1908_v61  ;;  %1302 = vmatpush.bf16.msrb.mxu2 %v1740_v57  ;;  %v2124_v61 = vld [vmem:[%s2346_s6] ss:$0 sm:$0xff]  ;;  %s2225_s6 = smov [#allocation7]  }
 0x168   :  { %s1411_s8 = sshll.u32 %s2225_s6, 4  ;;  %s1412_s8 = int_to_ptr.vmem [resolvable:$true] %s1411_s8 }
 0x16a   :  { %1341 = vmatpush.bf16.msra.mxu0 %v1752_v60 }
 0x16b   :  { %1324 = vmatpush.bf16.msra.mxu1 %v1876_v9 }
 0x16f   :  { %1325 = vmatpush.bf16.msra.mxu1 %v1844_v21 }
 0x173   :  { %1326 = vmatpush.bf16.msra.mxu1 %v1812_v34 }
 0x177   :  { %1327 = vmatpush.bf16.msra.mxu1 %v1780_v47 }
 0x17b   :  { %1328 = vmatpush.bf16.msra.mxu1 %v1748_v59 }
 0x1db   :  { %v835_v62 = vpop.f32.mrf.mxu1 }
 0x1dc   :  { %v836_v63 = vadd.f32 %v2124_v61, %v835_v62 }
 0x1de   :  { %v839_v0 = vmax.f32 %v836_v63, 0.0 }
 0x1e0   :  { %v840_v1 = vpack.c.bf16 %v839_v0, %v839_v0 }
 0x1e2   :  { %1251 = vmatmul.bf16.vlgmr.msra.gmra.mxu2 %v840_v1  ;;  %1264 = vmatmul.bf16.vlgmr.msra.gmra.mxu3 %v840_v1 }
 0x1e3   :  { %1277 = vmatmul.bf16.vlgmr.msrb.gmra.mxu1 %v840_v1  ;;  %1290 = vmatmul.bf16.vlgmr.msrb.gmra.mxu0 %v840_v1  ;;  %v837_v2 = vpop.f32.mrf.mxu1 }
 0x1f2   :  { %1303 = vmatmul.bf16.vlgmr.msrb.gmra.mxu2 %v840_v1  ;;  %1316 = vmatmul.bf16.vlgmr.msrb.gmra.mxu3 %v840_v1 }
 0x1f3   :  { %1329 = vmatmul.bf16.vlgmr.msra.gmra.mxu1 %v840_v1  ;;  %1342 = vmatmul.bf16.vlgmr.msra.gmra.mxu0 %v840_v1 }
 0x260   :  { %v1278_v6 = vpop.f32.mrf.mxu1  ;;  %v1291_v7 = vpop.f32.mrf.mxu0 }
 0x261   :  { %v1279_v8 = vadd.f32 %v1278_v6, %v909_v4  ;;  %v1292_v9 = vadd.f32 %v1291_v7, %v910_v5 }
 0x263   :  { %v1349_v12 = vmul.f32 0.5, %v1279_v8  ;;  %v1350_v13 = vmul.f32 0.5, %v1292_v9 }
 0x265   :  { %2125 = vtanh.f32 %v1349_v12  ;;  %v1252_v14 = vpop.f32.mrf.mxu2  ;;  %v1265_v15 = vpop.f32.mrf.mxu3 }
 0x266   :  { %2127 = vtanh.f32 %v1350_v13  ;;  %v1253_v16 = vadd.f32 %v1252_v14, %v907_v10  ;;  %v1266_v17 = vadd.f32 %v1265_v15, %v908_v11 }
 0x268   :  { %v1347_v18 = vmul.f32 0.5, %v1253_v16  ;;  %v1348_v19 = vmul.f32 0.5, %v1266_v17  ;;  %v1280_v20 = vpop.f32.mrf.mxu1  ;;  %v1293_v21 = vpop.f32.mrf.mxu0 }
 0x26a   :  { %2129 = vtanh.f32 %v1347_v18 }
 0x26b   :  { %v2126_v22 = vpop.eup %2125  ;;  %2131 = vtanh.f32 %v1348_v19 }
 0x26c   :  { %v2128_v23 = vpop.eup %2127  ;;  %v1365_v24 = vadd.f32 1.0, %v2126_v22 }
 0x26d   :  { %v1366_v25 = vadd.f32 1.0, %v2128_v23  ;;  %v1254_v26 = vpop.f32.mrf.mxu2  ;;  %v1267_v27 = vpop.f32.mrf.mxu3 }
 0x26e   :  { %v1373_v31 = vmul.f32 0.5, %v1365_v24 }
 0x26f   :  { %v1374_v32 = vmul.f32 0.5, %v1366_v25 }
 0x270   :  { %v2130_v30 = vpop.eup %2129  ;;  %v1330_v33 = vpop.f32.mrf.mxu1  ;;  %v1388_v44 = vrot.slane %v1373_v31, 4 }
 0x271   :  { %v1343_v34 = vpop.f32.mrf.mxu0  ;;  %v2132_v35 = vpop.eup %2131  ;;  %v1363_v36 = vadd.f32 1.0, %v2130_v30  ;;  %v1331_v37 = vadd.f32 %v1330_v33, %v913_v28  ;;  %v1389_v45 = vrot.slane %v1374_v32, 2 }
 0x272   :  { %v1344_v38 = vadd.f32 %v1343_v34, %v914_v29  ;;  %v1364_v39 = vadd.f32 1.0, %v2132_v35 }
 0x273   :  { %v1353_v42 = vmul.f32 0.5, %v1331_v37  ;;  %v1371_v47 = vmul.f32 0.5, %v1363_v36  ;;  %v1396_v53 = vsel %vm1395_vm1, %v1388_v44, %v1389_v45 }
 0x274   :  { %v1354_v43 = vmul.f32 0.5, %v1344_v38  ;;  %v1372_v46 = vmul.f32 0.5, %v1364_v39 }
 0x275   :  { %2133 = vtanh.f32 %v1353_v42  ;;  %v1304_v48 = vpop.f32.mrf.mxu2  ;;  %v1317_v49 = vpop.f32.mrf.mxu3 }
 0x276   :  { %v1387_v50 = vrot.slane %v1372_v46, 6  ;;  %2135 = vtanh.f32 %v1354_v43  ;;  %v1305_v51 = vadd.f32 %v1304_v48, %v911_v40  ;;  %v1318_v52 = vadd.f32 %v1317_v49, %v912_v41 }
 0x278   :  { %v1394_v54 = vsel %vm1393_vm2, %v1371_v47, %v1387_v50  ;;  %v1351_v55 = vmul.f32 0.5, %v1305_v51  ;;  %v1352_v56 = vmul.f32 0.5, %v1318_v52  ;;  %v1332_v57 = vpop.f32.mrf.mxu1 }
 0x279   :  { %v1345_v58 = vpop.f32.mrf.mxu0  ;;  %v1398_v59 = vsel %vm1397_vm3, %v1394_v54, %v1396_v53 }
 0x27a   :  { %2137 = vtanh.f32 %v1351_v55  ;;  %1404 = vst [vmem:[#allocation7] sm:$0xff] %v1398_v59 }
 0x27b   :  { %v2134_v60 = vpop.eup %2133  ;;  %2139 = vtanh.f32 %v1352_v56 }
 0x27c   :  { %v2136_v61 = vpop.eup %2135  ;;  %v1369_v62 = vadd.f32 1.0, %v2134_v60 }
 0x27d   :  { %v1370_v63 = vadd.f32 1.0, %v2136_v61  ;;  %v1306_v0 = vpop.f32.mrf.mxu2  ;;  %v1319_v1 = vpop.f32.mrf.mxu3 }
 0x27e   :  { %v1377_v3 = vmul.f32 0.5, %v1369_v62 }
 0x27f   :  { %v1378_v4 = vmul.f32 0.5, %v1370_v63 }
 0x280   :  { %v2138_v2 = vpop.eup %2137  ;;  %v1391_v8 = vrot.slane %v1377_v3, 4 }
 0x281   :  { %v2140_v5 = vpop.eup %2139  ;;  %v1367_v6 = vadd.f32 1.0, %v2138_v2  ;;  %v1392_v9 = vrot.slane %v1378_v4, 2 }
 0x282   :  { %v1368_v7 = vadd.f32 1.0, %v2140_v5 }
 0x283   :  { %v1375_v11 = vmul.f32 0.5, %v1367_v6  ;;  %v1400_v13 = vsel %vm1395_vm1, %v1391_v8, %v1392_v9 }
 0x284   :  { %v1376_v10 = vmul.f32 0.5, %v1368_v7 }
 0x286   :  { %v1390_v12 = vrot.slane %v1376_v10, 6 }
 0x288   :  { %v1399_v14 = vsel %vm1393_vm2, %v1375_v11, %v1390_v12 }
 0x289   :  { %v1401_v15 = vsel %vm1397_vm3, %v1399_v14, %v1400_v13 }
 0x28a   :  { %1405 = vst [vmem:[#allocation7 + $0x8] sm:$0xff] %v1401_v15 }
 0x28b   :  { %1416 = dma.vmem_to_hbm [thread:$0]  %s1412_s8, 256, %s1414_s26, [#allocation4]  }
 0x28c   :  { %2217 = dma.done.wait [#allocation4], 256  }
 0x28d   :  { %2218 = vsyncadd [#allocation4], 4294967040 }
 0x28e   :  { %1421 = vsyncpa [#allocation3], 1 }
 0x28f   :  { %1422 = vsyncpa [#allocation6], 1 }
 0x290   :  { %1423 = vsyncpa [#allocation4], 1 }

</bundles_post_ra>
